<compile_context>
chip_gen: v7x
topology: tpu7x:2x2x1
jax: 0.10.0
libtpu: 0.0.40
codegen_flags: <defaults>
</compile_context>

<pallas_src>
import jax
import jax.numpy as jnp
import numpy as np
from jax.experimental import pallas as pl
from jax.experimental.pallas import tpu as pltpu

EMBED_DIM = 64
FFN_DIM = 128
NUM_HEADS = 8
HEAD_DIM = EMBED_DIM // NUM_HEADS
LN_EPS = 1e-5

# Keep 1 on v5e/v6e (single TensorCore).  Only set 2 on v7x when each block has
# roughly >= 512 rows (BB*T) — at B=2, T=16 the per-grid-step overhead and the
# halved matmul M would outweigh the 2-TC parallelism.
NUM_BATCH_BLOCKS = 1


def _layer_norm(x, gamma, beta):
    mean = jnp.mean(x, axis=-1, keepdims=True)
    var = jnp.mean(jnp.square(x - mean), axis=-1, keepdims=True)
    return (x - mean) * jax.lax.rsqrt(var + LN_EPS) * gamma + beta


def encoder_layer_kernel(x_ref, wqkv_ref, bqkv_ref, wo_ref, w1_ref, w2_ref,
                         vecs_ref, o_ref):
    BB, T, E = x_ref.shape
    H = NUM_HEADS
    D = E // H

    x = x_ref[...]                               # (BB, T, E)
    x_rows = x.reshape(BB * T, E)                # leading-dim merge only
    residual = x_rows

    # Packed small vectors: rows [bo, b2, ln1_g, ln1_b, ln2_g, ln2_b, b1].
    vecs = vecs_ref[...]                         # (7, FFN_DIM)
    bo = vecs[0:1, :E]
    b2 = vecs[1:2, :E]
    ln1_g = vecs[2:3, :E]
    ln1_b = vecs[3:4, :E]
    ln2_g = vecs[4:5, :E]
    ln2_b = vecs[5:6, :E]
    b1 = vecs[6:7, :]

    # ---- fused QKV projection: one wide MXU matmul ----
    # (1/sqrt(D) is already folded into the q columns/bias at prep time.)
    qkv = jnp.dot(x_rows, wqkv_ref[...],
                  preferred_element_type=jnp.float32) + bqkv_ref[...]  # (BB*T, 3E)
    qkv = qkv.reshape(BB, T, 3 * E)

    # ---- per-head attention (D=8 split only here, via static lane slices) ----
    ctx_heads = []
    for h in range(H):
        q_h = qkv[:, :, h * D:(h + 1) * D]                    # (BB, T, D)
        k_h = qkv[:, :, E + h * D:E + (h + 1) * D]            # (BB, T, D)
        v_h = qkv[:, :, 2 * E + h * D:2 * E + (h + 1) * D]    # (BB, T, D)

        s = jnp.einsum('btd,bsd->bts', q_h, k_h,
                       preferred_element_type=jnp.float32)    # (BB, T, T)
        s = s - jnp.max(s, axis=-1, keepdims=True)
        p = jnp.exp(s)
        p = p / jnp.sum(p, axis=-1, keepdims=True)             # exact softmax
        ctx_h = jnp.einsum('bts,bsd->btd', p, v_h,
                           preferred_element_type=jnp.float32)  # (BB, T, D)
        ctx_heads.append(ctx_h.reshape(BB * T, D))

    # Head reduction happens inside the MXU: concat heads along lanes and do a
    # single (BB*T, E) @ (E, E) output projection.
    ctx = jnp.concatenate(ctx_heads, axis=-1)                   # (BB*T, E)
    attn = jnp.dot(ctx, wo_ref[...],
                   preferred_element_type=jnp.float32) + bo     # (BB*T, E)

    # ---- residual + LayerNorm 1 (dropout1 identity at inference) ----
    x_rows = residual + attn
    x_rows = _layer_norm(x_rows, ln1_g, ln1_b)

    # ---- FFN: relu(fc1) -> fc2, residual, LayerNorm 2 ----
    residual = x_rows
    h1 = jnp.maximum(
        jnp.dot(x_rows, w1_ref[...], preferred_element_type=jnp.float32) + b1,
        0.0)
    h2 = jnp.dot(h1, w2_ref[...], preferred_element_type=jnp.float32) + b2
    x_rows = residual + h2
    x_rows = _layer_norm(x_rows, ln2_g, ln2_b)

    # ---- lane-dense store: pack pairs of batch elements -> last dim 2*E=128 ----
    y = x_rows.reshape(BB, T, E)
    pieces = [jnp.concatenate([y[j], y[j + 1]], axis=-1)        # (T, 2E)
              for j in range(0, BB, 2)]
    o_ref[...] = jnp.stack(pieces, axis=0).astype(o_ref.dtype)  # (BB//2, T, 2E)


def init_params(key):
    ks = jax.random.split(key, 12)
    w = lambda k, shape: jax.random.normal(k, shape, jnp.float32) * 0.02
    b = lambda k, shape: jax.random.normal(k, shape, jnp.float32) * 0.01
    # Weights stored as (in, out): kernel computes x @ W.
    return {
        "wq": w(ks[0], (EMBED_DIM, EMBED_DIM)), "bq": b(ks[1], (1, EMBED_DIM)),
        "wk": w(ks[2], (EMBED_DIM, EMBED_DIM)), "bk": b(ks[3], (1, EMBED_DIM)),
        "wv": w(ks[4], (EMBED_DIM, EMBED_DIM)), "bv": b(ks[5], (1, EMBED_DIM)),
        "wo": w(ks[6], (EMBED_DIM, EMBED_DIM)), "bo": b(ks[7], (1, EMBED_DIM)),
        "ln1_g": jnp.ones((1, EMBED_DIM), jnp.float32),
        "ln1_b": jnp.zeros((1, EMBED_DIM), jnp.float32),
        "w1": w(ks[8], (EMBED_DIM, FFN_DIM)), "b1": b(ks[9], (1, FFN_DIM)),
        "w2": w(ks[10], (FFN_DIM, EMBED_DIM)), "b2": b(ks[11], (1, EMBED_DIM)),
        "ln2_g": jnp.ones((1, EMBED_DIM), jnp.float32),
        "ln2_b": jnp.zeros((1, EMBED_DIM), jnp.float32),
    }


def prepare_params(p):
    """One-time transform: fold q-scaling into wq/bq, fuse the QKV weights into
    a single (E, 3E) matrix, pack the small bias / LayerNorm vectors."""
    scale = 1.0 / np.sqrt(HEAD_DIM)
    w_qkv = jnp.concatenate([p["wq"] * scale, p["wk"], p["wv"]], axis=1)  # (E, 3E)
    b_qkv = jnp.concatenate([p["bq"] * scale, p["bk"], p["bv"]], axis=1)  # (1, 3E)

    def pad_e(v):  # (1, E) -> (1, FFN_DIM), zero padded (padding never read)
        return jnp.pad(v, ((0, 0), (0, FFN_DIM - EMBED_DIM)))

    vecs = jnp.concatenate(
        [pad_e(p["bo"]), pad_e(p["b2"]),
         pad_e(p["ln1_g"]), pad_e(p["ln1_b"]),
         pad_e(p["ln2_g"]), pad_e(p["ln2_b"]),
         p["b1"]], axis=0)                     # (7, FFN_DIM)

    return {"w_qkv": w_qkv, "b_qkv": b_qkv, "wo": p["wo"],
            "w1": p["w1"], "w2": p["w2"], "vecs": vecs}


def _forward(x_bet, kp, num_batch_blocks):
    """x_bet: (B, E, T) float32, like the PyTorch module input."""
    B, E, T = x_bet.shape
    assert E == EMBED_DIM
    assert B % num_batch_blocks == 0
    BB = B // num_batch_blocks
    assert BB % 2 == 0, "lane-dense output packing pairs batch elements"

    # TODO(synk): fold this transpose into the kernel (contract over E straight
    # from the (E, T) layout) when activation HBM traffic matters.
    x = jnp.transpose(x_bet, (0, 2, 1))  # (B, T, E)

    weight_args = (kp["w_qkv"], kp["b_qkv"], kp["wo"], kp["w1"], kp["w2"],
                   kp["vecs"])

    def full_spec(a):
        nd = a.ndim
        return pl.BlockSpec(a.shape, lambda i, _n=nd: (0,) * _n)

    in_specs = ([pl.BlockSpec((BB, T, E), lambda i: (i, 0, 0))]
                + [full_spec(a) for a in weight_args])

    out_packed = pl.pallas_call(
        encoder_layer_kernel,
        out_shape=jax.ShapeDtypeStruct((B // 2, T, 2 * E), jnp.float32),
        grid_spec=pltpu.PrefetchScalarGridSpec(
            num_scalar_prefetch=0,
            grid=(num_batch_blocks,),
            in_specs=in_specs,
            out_specs=pl.BlockSpec((BB // 2, T, 2 * E), lambda i: (i, 0, 0)),
        ),
        compiler_params=pltpu.CompilerParams(
            dimension_semantics=("parallel",)),
    )(x, *weight_args)

    # Unpack the batch-pair lane packing and return (B, E, T) like the PyTorch
    # module; XLA fuses this with the final permute into one copy.
    out = (out_packed.reshape(B // 2, T, 2, E)
           .transpose(0, 2, 3, 1)
           .reshape(B, E, T))
    return out


transformer_encoder_layer = jax.jit(_forward,
                                    static_argnames=("num_batch_blocks",))


def reference(x_bet, p):
    """Pure-JAX reference mirroring the PyTorch forward (post-norm, no dropout)."""
    x = jnp.transpose(x_bet, (0, 2, 1))  # (B, T, E)
    residual = x
    B, T, E = x.shape
    q = (x @ p["wq"] + p["bq"]) * (1.0 / np.sqrt(HEAD_DIM))
    k = x @ p["wk"] + p["bk"]
    v = x @ p["wv"] + p["bv"]
    qh = q.reshape(B, T, NUM_HEADS, HEAD_DIM).transpose(0, 2, 1, 3)
    kh = k.reshape(B, T, NUM_HEADS, HEAD_DIM).transpose(0, 2, 1, 3)
    vh = v.reshape(B, T, NUM_HEADS, HEAD_DIM).transpose(0, 2, 1, 3)
    sc = jnp.einsum("bhtd,bhsd->bhts", qh, kh)
    pw = jax.nn.softmax(sc, axis=-1)
    ao = jnp.einsum("bhts,bhsd->bhtd", pw, vh).transpose(0, 2, 1, 3).reshape(B, T, E)
    ao = ao @ p["wo"] + p["bo"]
    x = residual + ao
    x = _layer_norm(x, p["ln1_g"], p["ln1_b"])
    residual = x
    h = jax.nn.relu(x @ p["w1"] + p["b1"])
    h = h @ p["w2"] + p["b2"]
    x = residual + h
    x = _layer_norm(x, p["ln2_g"], p["ln2_b"])
    return jnp.transpose(x, (0, 2, 1))


if __name__ == "__main__":
    key = jax.random.PRNGKey(0)
    k_x, k_p = jax.random.split(key)
    B, T = 2, 16
    # PyTorch-style input layout: (batch, embedding_dim, seq_len)
    x = jax.random.normal(k_x, (B, EMBED_DIM, T), jnp.float32)
    params = init_params(k_p)
    kparams = prepare_params(params)

    out = transformer_encoder_layer(x, kparams,
                                    num_batch_blocks=NUM_BATCH_BLOCKS)
    out = jax.block_until_ready(out)

    # High-precision reference (default f32 matmul on TPU is bf16-pass based);
    # tolerance tightened vs. the previous version now that softmax uses exact
    # division instead of the approximate EUP reciprocal.
    with jax.default_matmul_precision("highest"):
        ref = jax.block_until_ready(reference(x, params))
    np.testing.assert_allclose(np.asarray(out), np.asarray(ref),
                               rtol=5e-3, atol=5e-3)
    assert out.shape == (B, EMBED_DIM, T)
    print("KERNEL_OK")
</pallas_src>

<mosaic_0001>
module attributes {stable_mosaic.version = 11 : i64} {
  func.func @encoder_layer_kernel(%arg0: i32, %arg1: memref<2x16x64xf32, #tpu.memory_space<vmem>>, %arg2: memref<64x192xf32, #tpu.memory_space<vmem>>, %arg3: memref<1x192xf32, #tpu.memory_space<vmem>>, %arg4: memref<64x64xf32, #tpu.memory_space<vmem>>, %arg5: memref<64x128xf32, #tpu.memory_space<vmem>>, %arg6: memref<128x64xf32, #tpu.memory_space<vmem>>, %arg7: memref<7x128xf32, #tpu.memory_space<vmem>>, %arg8: memref<1x16x128xf32, #tpu.memory_space<vmem>>) attributes {dimension_semantics = [#tpu.dimension_semantics<parallel>], iteration_bounds = array<i64: 1>, scalar_prefetch = 0 : i64, scratch_operands = 0 : i64, tpu.core_type = #tpu.core_type<tc>, window_params = [{transform_indices = @transform_0, window_bounds = array<i64: 2, 16, 64>}, {pipeline_mode = #tpu.pipeline_mode<synchronous>, transform_indices = @transform_1, window_bounds = array<i64: 64, 192>}, {pipeline_mode = #tpu.pipeline_mode<synchronous>, transform_indices = @transform_2, window_bounds = array<i64: 1, 192>}, {pipeline_mode = #tpu.pipeline_mode<synchronous>, transform_indices = @transform_3, window_bounds = array<i64: 64, 64>}, {pipeline_mode = #tpu.pipeline_mode<synchronous>, transform_indices = @transform_4, window_bounds = array<i64: 64, 128>}, {pipeline_mode = #tpu.pipeline_mode<synchronous>, transform_indices = @transform_5, window_bounds = array<i64: 128, 64>}, {pipeline_mode = #tpu.pipeline_mode<synchronous>, transform_indices = @transform_6, window_bounds = array<i64: 7, 128>}, {transform_indices = @transform_7, window_bounds = array<i64: 1, 16, 128>}]} {
    %c0 = arith.constant 0 : index
    %c0_0 = arith.constant 0 : index
    %c0_1 = arith.constant 0 : index
    %0 = vector.load %arg1[%c0, %c0_0, %c0_1] : memref<2x16x64xf32, #tpu.memory_space<vmem>>, vector<2x16x64xf32>
    %1 = vector.shape_cast %0 : vector<2x16x64xf32> to vector<32x64xf32>
    %c0_2 = arith.constant 0 : index
    %c0_3 = arith.constant 0 : index
    %2 = vector.load %arg7[%c0_2, %c0_3] : memref<7x128xf32, #tpu.memory_space<vmem>>, vector<7x128xf32>
    %3 = vector.extract_strided_slice %2 {offsets = [0, 0], sizes = [1, 64], strides = [1, 1]} : vector<7x128xf32> to vector<1x64xf32>
    %4 = vector.extract_strided_slice %2 {offsets = [1, 0], sizes = [1, 64], strides = [1, 1]} : vector<7x128xf32> to vector<1x64xf32>
    %5 = vector.extract_strided_slice %2 {offsets = [2, 0], sizes = [1, 64], strides = [1, 1]} : vector<7x128xf32> to vector<1x64xf32>
    %6 = vector.extract_strided_slice %2 {offsets = [3, 0], sizes = [1, 64], strides = [1, 1]} : vector<7x128xf32> to vector<1x64xf32>
    %7 = vector.extract_strided_slice %2 {offsets = [4, 0], sizes = [1, 64], strides = [1, 1]} : vector<7x128xf32> to vector<1x64xf32>
    %8 = vector.extract_strided_slice %2 {offsets = [5, 0], sizes = [1, 64], strides = [1, 1]} : vector<7x128xf32> to vector<1x64xf32>
    %9 = vector.extract_strided_slice %2 {offsets = [6, 0], sizes = [1, 128], strides = [1, 1]} : vector<7x128xf32> to vector<1x128xf32>
    %c0_4 = arith.constant 0 : index
    %c0_5 = arith.constant 0 : index
    %10 = vector.load %arg2[%c0_4, %c0_5] : memref<64x192xf32, #tpu.memory_space<vmem>>, vector<64x192xf32>
    %cst = arith.constant dense<0.000000e+00> : vector<32x192xf32>
    %11 = tpu.matmul %1, %10, %cst {dimension_numbers = #tpu.dot_dimension_numbers<[1], [0], [0], [1], [0, 0, 1, 1], [], []>} : vector<32x64xf32>, vector<64x192xf32>, vector<32x192xf32> -> vector<32x192xf32>
    %c0_6 = arith.constant 0 : index
    %c0_7 = arith.constant 0 : index
    %12 = vector.load %arg3[%c0_6, %c0_7] : memref<1x192xf32, #tpu.memory_space<vmem>>, vector<1x192xf32>
    %13 = vector.broadcast %12 : vector<1x192xf32> to vector<32x192xf32>
    %14 = arith.addf %11, %13 : vector<32x192xf32>
    %15 = vector.shape_cast %14 : vector<32x192xf32> to vector<2x16x192xf32>
    %16 = vector.extract_strided_slice %15 {offsets = [0, 0, 0], sizes = [2, 16, 8], strides = [1, 1, 1]} : vector<2x16x192xf32> to vector<2x16x8xf32>
    %17 = vector.extract_strided_slice %15 {offsets = [0, 0, 64], sizes = [2, 16, 8], strides = [1, 1, 1]} : vector<2x16x192xf32> to vector<2x16x8xf32>
    %18 = vector.extract_strided_slice %15 {offsets = [0, 0, 128], sizes = [2, 16, 8], strides = [1, 1, 1]} : vector<2x16x192xf32> to vector<2x16x8xf32>
    "tpu.trace_start"() <{level = 10 : i32, message = "btd,bsd->bts"}> : () -> ()
    %cst_8 = arith.constant dense<0.000000e+00> : vector<2x16x16xf32>
    %19 = tpu.matmul %16, %17, %cst_8 {dimension_numbers = #tpu.dot_dimension_numbers<[2], [2], [1], [1], [0, 0, 0, 1, 1, 1], [0], [0]>} : vector<2x16x8xf32>, vector<2x16x8xf32>, vector<2x16x16xf32> -> vector<2x16x16xf32>
    "tpu.trace_stop"() : () -> ()
    %cst_9 = arith.constant dense<0xFF800000> : vector<2x16xf32>
    %20 = vector.multi_reduction <maximumf>, %19, %cst_9 [2] : vector<2x16x16xf32> to vector<2x16xf32>
    %21 = vector.shape_cast %20 : vector<2x16xf32> to vector<2x16x1xf32>
    %22 = vector.broadcast %21 : vector<2x16x1xf32> to vector<2x16x16xf32>
    %23 = arith.subf %19, %22 : vector<2x16x16xf32>
    %24 = math.exp %23 : vector<2x16x16xf32>
    %cst_10 = arith.constant dense<0.000000e+00> : vector<2x16xf32>
    %25 = vector.multi_reduction <add>, %24, %cst_10 [2] : vector<2x16x16xf32> to vector<2x16xf32>
    %26 = vector.shape_cast %25 : vector<2x16xf32> to vector<2x16x1xf32>
    %27 = vector.broadcast %26 : vector<2x16x1xf32> to vector<2x16x16xf32>
    %28 = arith.divf %24, %27 : vector<2x16x16xf32>
    "tpu.trace_start"() <{level = 10 : i32, message = "bts,bsd->btd"}> : () -> ()
    %cst_11 = arith.constant dense<0.000000e+00> : vector<2x16x8xf32>
    %29 = tpu.matmul %28, %18, %cst_11 {dimension_numbers = #tpu.dot_dimension_numbers<[2], [1], [1], [2], [0, 0, 0, 1, 1, 2], [0], [0]>} : vector<2x16x16xf32>, vector<2x16x8xf32>, vector<2x16x8xf32> -> vector<2x16x8xf32>
    "tpu.trace_stop"() : () -> ()
    %30 = vector.shape_cast %29 : vector<2x16x8xf32> to vector<32x8xf32>
    %31 = vector.extract_strided_slice %15 {offsets = [0, 0, 8], sizes = [2, 16, 8], strides = [1, 1, 1]} : vector<2x16x192xf32> to vector<2x16x8xf32>
    %32 = vector.extract_strided_slice %15 {offsets = [0, 0, 72], sizes = [2, 16, 8], strides = [1, 1, 1]} : vector<2x16x192xf32> to vector<2x16x8xf32>
    %33 = vector.extract_strided_slice %15 {offsets = [0, 0, 136], sizes = [2, 16, 8], strides = [1, 1, 1]} : vector<2x16x192xf32> to vector<2x16x8xf32>
    "tpu.trace_start"() <{level = 10 : i32, message = "btd,bsd->bts"}> : () -> ()
    %cst_12 = arith.constant dense<0.000000e+00> : vector<2x16x16xf32>
    %34 = tpu.matmul %31, %32, %cst_12 {dimension_numbers = #tpu.dot_dimension_numbers<[2], [2], [1], [1], [0, 0, 0, 1, 1, 1], [0], [0]>} : vector<2x16x8xf32>, vector<2x16x8xf32>, vector<2x16x16xf32> -> vector<2x16x16xf32>
    "tpu.trace_stop"() : () -> ()
    %cst_13 = arith.constant dense<0xFF800000> : vector<2x16xf32>
    %35 = vector.multi_reduction <maximumf>, %34, %cst_13 [2] : vector<2x16x16xf32> to vector<2x16xf32>
    %36 = vector.shape_cast %35 : vector<2x16xf32> to vector<2x16x1xf32>
    %37 = vector.broadcast %36 : vector<2x16x1xf32> to vector<2x16x16xf32>
    %38 = arith.subf %34, %37 : vector<2x16x16xf32>
    %39 = math.exp %38 : vector<2x16x16xf32>
    %cst_14 = arith.constant dense<0.000000e+00> : vector<2x16xf32>
    %40 = vector.multi_reduction <add>, %39, %cst_14 [2] : vector<2x16x16xf32> to vector<2x16xf32>
    %41 = vector.shape_cast %40 : vector<2x16xf32> to vector<2x16x1xf32>
    %42 = vector.broadcast %41 : vector<2x16x1xf32> to vector<2x16x16xf32>
    %43 = arith.divf %39, %42 : vector<2x16x16xf32>
    "tpu.trace_start"() <{level = 10 : i32, message = "bts,bsd->btd"}> : () -> ()
    %cst_15 = arith.constant dense<0.000000e+00> : vector<2x16x8xf32>
    %44 = tpu.matmul %43, %33, %cst_15 {dimension_numbers = #tpu.dot_dimension_numbers<[2], [1], [1], [2], [0, 0, 0, 1, 1, 2], [0], [0]>} : vector<2x16x16xf32>, vector<2x16x8xf32>, vector<2x16x8xf32> -> vector<2x16x8xf32>
    "tpu.trace_stop"() : () -> ()
    %45 = vector.shape_cast %44 : vector<2x16x8xf32> to vector<32x8xf32>
    %46 = vector.extract_strided_slice %15 {offsets = [0, 0, 16], sizes = [2, 16, 8], strides = [1, 1, 1]} : vector<2x16x192xf32> to vector<2x16x8xf32>
    %47 = vector.extract_strided_slice %15 {offsets = [0, 0, 80], sizes = [2, 16, 8], strides = [1, 1, 1]} : vector<2x16x192xf32> to vector<2x16x8xf32>
    %48 = vector.extract_strided_slice %15 {offsets = [0, 0, 144], sizes = [2, 16, 8], strides = [1, 1, 1]} : vector<2x16x192xf32> to vector<2x16x8xf32>
    "tpu.trace_start"() <{level = 10 : i32, message = "btd,bsd->bts"}> : () -> ()
    %cst_16 = arith.constant dense<0.000000e+00> : vector<2x16x16xf32>
    %49 = tpu.matmul %46, %47, %cst_16 {dimension_numbers = #tpu.dot_dimension_numbers<[2], [2], [1], [1], [0, 0, 0, 1, 1, 1], [0], [0]>} : vector<2x16x8xf32>, vector<2x16x8xf32>, vector<2x16x16xf32> -> vector<2x16x16xf32>
    "tpu.trace_stop"() : () -> ()
    %cst_17 = arith.constant dense<0xFF800000> : vector<2x16xf32>
    %50 = vector.multi_reduction <maximumf>, %49, %cst_17 [2] : vector<2x16x16xf32> to vector<2x16xf32>
    %51 = vector.shape_cast %50 : vector<2x16xf32> to vector<2x16x1xf32>
    %52 = vector.broadcast %51 : vector<2x16x1xf32> to vector<2x16x16xf32>
    %53 = arith.subf %49, %52 : vector<2x16x16xf32>
    %54 = math.exp %53 : vector<2x16x16xf32>
    %cst_18 = arith.constant dense<0.000000e+00> : vector<2x16xf32>
    %55 = vector.multi_reduction <add>, %54, %cst_18 [2] : vector<2x16x16xf32> to vector<2x16xf32>
    %56 = vector.shape_cast %55 : vector<2x16xf32> to vector<2x16x1xf32>
    %57 = vector.broadcast %56 : vector<2x16x1xf32> to vector<2x16x16xf32>
    %58 = arith.divf %54, %57 : vector<2x16x16xf32>
    "tpu.trace_start"() <{level = 10 : i32, message = "bts,bsd->btd"}> : () -> ()
    %cst_19 = arith.constant dense<0.000000e+00> : vector<2x16x8xf32>
    %59 = tpu.matmul %58, %48, %cst_19 {dimension_numbers = #tpu.dot_dimension_numbers<[2], [1], [1], [2], [0, 0, 0, 1, 1, 2], [0], [0]>} : vector<2x16x16xf32>, vector<2x16x8xf32>, vector<2x16x8xf32> -> vector<2x16x8xf32>
    "tpu.trace_stop"() : () -> ()
    %60 = vector.shape_cast %59 : vector<2x16x8xf32> to vector<32x8xf32>
    %61 = vector.extract_strided_slice %15 {offsets = [0, 0, 24], sizes = [2, 16, 8], strides = [1, 1, 1]} : vector<2x16x192xf32> to vector<2x16x8xf32>
    %62 = vector.extract_strided_slice %15 {offsets = [0, 0, 88], sizes = [2, 16, 8], strides = [1, 1, 1]} : vector<2x16x192xf32> to vector<2x16x8xf32>
    %63 = vector.extract_strided_slice %15 {offsets = [0, 0, 152], sizes = [2, 16, 8], strides = [1, 1, 1]} : vector<2x16x192xf32> to vector<2x16x8xf32>
    "tpu.trace_start"() <{level = 10 : i32, message = "btd,bsd->bts"}> : () -> ()
    %cst_20 = arith.constant dense<0.000000e+00> : vector<2x16x16xf32>
    %64 = tpu.matmul %61, %62, %cst_20 {dimension_numbers = #tpu.dot_dimension_numbers<[2], [2], [1], [1], [0, 0, 0, 1, 1, 1], [0], [0]>} : vector<2x16x8xf32>, vector<2x16x8xf32>, vector<2x16x16xf32> -> vector<2x16x16xf32>
    "tpu.trace_stop"() : () -> ()
    %cst_21 = arith.constant dense<0xFF800000> : vector<2x16xf32>
    %65 = vector.multi_reduction <maximumf>, %64, %cst_21 [2] : vector<2x16x16xf32> to vector<2x16xf32>
    %66 = vector.shape_cast %65 : vector<2x16xf32> to vector<2x16x1xf32>
    %67 = vector.broadcast %66 : vector<2x16x1xf32> to vector<2x16x16xf32>
    %68 = arith.subf %64, %67 : vector<2x16x16xf32>
    %69 = math.exp %68 : vector<2x16x16xf32>
    %cst_22 = arith.constant dense<0.000000e+00> : vector<2x16xf32>
    %70 = vector.multi_reduction <add>, %69, %cst_22 [2] : vector<2x16x16xf32> to vector<2x16xf32>
    %71 = vector.shape_cast %70 : vector<2x16xf32> to vector<2x16x1xf32>
    %72 = vector.broadcast %71 : vector<2x16x1xf32> to vector<2x16x16xf32>
    %73 = arith.divf %69, %72 : vector<2x16x16xf32>
    "tpu.trace_start"() <{level = 10 : i32, message = "bts,bsd->btd"}> : () -> ()
    %cst_23 = arith.constant dense<0.000000e+00> : vector<2x16x8xf32>
    %74 = tpu.matmul %73, %63, %cst_23 {dimension_numbers = #tpu.dot_dimension_numbers<[2], [1], [1], [2], [0, 0, 0, 1, 1, 2], [0], [0]>} : vector<2x16x16xf32>, vector<2x16x8xf32>, vector<2x16x8xf32> -> vector<2x16x8xf32>
    "tpu.trace_stop"() : () -> ()
    %75 = vector.shape_cast %74 : vector<2x16x8xf32> to vector<32x8xf32>
    %76 = vector.extract_strided_slice %15 {offsets = [0, 0, 32], sizes = [2, 16, 8], strides = [1, 1, 1]} : vector<2x16x192xf32> to vector<2x16x8xf32>
    %77 = vector.extract_strided_slice %15 {offsets = [0, 0, 96], sizes = [2, 16, 8], strides = [1, 1, 1]} : vector<2x16x192xf32> to vector<2x16x8xf32>
    %78 = vector.extract_strided_slice %15 {offsets = [0, 0, 160], sizes = [2, 16, 8], strides = [1, 1, 1]} : vector<2x16x192xf32> to vector<2x16x8xf32>
    "tpu.trace_start"() <{level = 10 : i32, message = "btd,bsd->bts"}> : () -> ()
    %cst_24 = arith.constant dense<0.000000e+00> : vector<2x16x16xf32>
    %79 = tpu.matmul %76, %77, %cst_24 {dimension_numbers = #tpu.dot_dimension_numbers<[2], [2], [1], [1], [0, 0, 0, 1, 1, 1], [0], [0]>} : vector<2x16x8xf32>, vector<2x16x8xf32>, vector<2x16x16xf32> -> vector<2x16x16xf32>
    "tpu.trace_stop"() : () -> ()
    %cst_25 = arith.constant dense<0xFF800000> : vector<2x16xf32>
    %80 = vector.multi_reduction <maximumf>, %79, %cst_25 [2] : vector<2x16x16xf32> to vector<2x16xf32>
    %81 = vector.shape_cast %80 : vector<2x16xf32> to vector<2x16x1xf32>
    %82 = vector.broadcast %81 : vector<2x16x1xf32> to vector<2x16x16xf32>
    %83 = arith.subf %79, %82 : vector<2x16x16xf32>
    %84 = math.exp %83 : vector<2x16x16xf32>
    %cst_26 = arith.constant dense<0.000000e+00> : vector<2x16xf32>
    %85 = vector.multi_reduction <add>, %84, %cst_26 [2] : vector<2x16x16xf32> to vector<2x16xf32>
    %86 = vector.shape_cast %85 : vector<2x16xf32> to vector<2x16x1xf32>
    %87 = vector.broadcast %86 : vector<2x16x1xf32> to vector<2x16x16xf32>
    %88 = arith.divf %84, %87 : vector<2x16x16xf32>
    "tpu.trace_start"() <{level = 10 : i32, message = "bts,bsd->btd"}> : () -> ()
    %cst_27 = arith.constant dense<0.000000e+00> : vector<2x16x8xf32>
    %89 = tpu.matmul %88, %78, %cst_27 {dimension_numbers = #tpu.dot_dimension_numbers<[2], [1], [1], [2], [0, 0, 0, 1, 1, 2], [0], [0]>} : vector<2x16x16xf32>, vector<2x16x8xf32>, vector<2x16x8xf32> -> vector<2x16x8xf32>
    "tpu.trace_stop"() : () -> ()
    %90 = vector.shape_cast %89 : vector<2x16x8xf32> to vector<32x8xf32>
    %91 = vector.extract_strided_slice %15 {offsets = [0, 0, 40], sizes = [2, 16, 8], strides = [1, 1, 1]} : vector<2x16x192xf32> to vector<2x16x8xf32>
    %92 = vector.extract_strided_slice %15 {offsets = [0, 0, 104], sizes = [2, 16, 8], strides = [1, 1, 1]} : vector<2x16x192xf32> to vector<2x16x8xf32>
    %93 = vector.extract_strided_slice %15 {offsets = [0, 0, 168], sizes = [2, 16, 8], strides = [1, 1, 1]} : vector<2x16x192xf32> to vector<2x16x8xf32>
    "tpu.trace_start"() <{level = 10 : i32, message = "btd,bsd->bts"}> : () -> ()
    %cst_28 = arith.constant dense<0.000000e+00> : vector<2x16x16xf32>
    %94 = tpu.matmul %91, %92, %cst_28 {dimension_numbers = #tpu.dot_dimension_numbers<[2], [2], [1], [1], [0, 0, 0, 1, 1, 1], [0], [0]>} : vector<2x16x8xf32>, vector<2x16x8xf32>, vector<2x16x16xf32> -> vector<2x16x16xf32>
    "tpu.trace_stop"() : () -> ()
    %cst_29 = arith.constant dense<0xFF800000> : vector<2x16xf32>
    %95 = vector.multi_reduction <maximumf>, %94, %cst_29 [2] : vector<2x16x16xf32> to vector<2x16xf32>
    %96 = vector.shape_cast %95 : vector<2x16xf32> to vector<2x16x1xf32>
    %97 = vector.broadcast %96 : vector<2x16x1xf32> to vector<2x16x16xf32>
    %98 = arith.subf %94, %97 : vector<2x16x16xf32>
    %99 = math.exp %98 : vector<2x16x16xf32>
    %cst_30 = arith.constant dense<0.000000e+00> : vector<2x16xf32>
    %100 = vector.multi_reduction <add>, %99, %cst_30 [2] : vector<2x16x16xf32> to vector<2x16xf32>
    %101 = vector.shape_cast %100 : vector<2x16xf32> to vector<2x16x1xf32>
    %102 = vector.broadcast %101 : vector<2x16x1xf32> to vector<2x16x16xf32>
    %103 = arith.divf %99, %102 : vector<2x16x16xf32>
    "tpu.trace_start"() <{level = 10 : i32, message = "bts,bsd->btd"}> : () -> ()
    %cst_31 = arith.constant dense<0.000000e+00> : vector<2x16x8xf32>
    %104 = tpu.matmul %103, %93, %cst_31 {dimension_numbers = #tpu.dot_dimension_numbers<[2], [1], [1], [2], [0, 0, 0, 1, 1, 2], [0], [0]>} : vector<2x16x16xf32>, vector<2x16x8xf32>, vector<2x16x8xf32> -> vector<2x16x8xf32>
    "tpu.trace_stop"() : () -> ()
    %105 = vector.shape_cast %104 : vector<2x16x8xf32> to vector<32x8xf32>
    %106 = vector.extract_strided_slice %15 {offsets = [0, 0, 48], sizes = [2, 16, 8], strides = [1, 1, 1]} : vector<2x16x192xf32> to vector<2x16x8xf32>
    %107 = vector.extract_strided_slice %15 {offsets = [0, 0, 112], sizes = [2, 16, 8], strides = [1, 1, 1]} : vector<2x16x192xf32> to vector<2x16x8xf32>
    %108 = vector.extract_strided_slice %15 {offsets = [0, 0, 176], sizes = [2, 16, 8], strides = [1, 1, 1]} : vector<2x16x192xf32> to vector<2x16x8xf32>
    "tpu.trace_start"() <{level = 10 : i32, message = "btd,bsd->bts"}> : () -> ()
    %cst_32 = arith.constant dense<0.000000e+00> : vector<2x16x16xf32>
    %109 = tpu.matmul %106, %107, %cst_32 {dimension_numbers = #tpu.dot_dimension_numbers<[2], [2], [1], [1], [0, 0, 0, 1, 1, 1], [0], [0]>} : vector<2x16x8xf32>, vector<2x16x8xf32>, vector<2x16x16xf32> -> vector<2x16x16xf32>
    "tpu.trace_stop"() : () -> ()
    %cst_33 = arith.constant dense<0xFF800000> : vector<2x16xf32>
    %110 = vector.multi_reduction <maximumf>, %109, %cst_33 [2] : vector<2x16x16xf32> to vector<2x16xf32>
    %111 = vector.shape_cast %110 : vector<2x16xf32> to vector<2x16x1xf32>
    %112 = vector.broadcast %111 : vector<2x16x1xf32> to vector<2x16x16xf32>
    %113 = arith.subf %109, %112 : vector<2x16x16xf32>
    %114 = math.exp %113 : vector<2x16x16xf32>
    %cst_34 = arith.constant dense<0.000000e+00> : vector<2x16xf32>
    %115 = vector.multi_reduction <add>, %114, %cst_34 [2] : vector<2x16x16xf32> to vector<2x16xf32>
    %116 = vector.shape_cast %115 : vector<2x16xf32> to vector<2x16x1xf32>
    %117 = vector.broadcast %116 : vector<2x16x1xf32> to vector<2x16x16xf32>
    %118 = arith.divf %114, %117 : vector<2x16x16xf32>
    "tpu.trace_start"() <{level = 10 : i32, message = "bts,bsd->btd"}> : () -> ()
    %cst_35 = arith.constant dense<0.000000e+00> : vector<2x16x8xf32>
    %119 = tpu.matmul %118, %108, %cst_35 {dimension_numbers = #tpu.dot_dimension_numbers<[2], [1], [1], [2], [0, 0, 0, 1, 1, 2], [0], [0]>} : vector<2x16x16xf32>, vector<2x16x8xf32>, vector<2x16x8xf32> -> vector<2x16x8xf32>
    "tpu.trace_stop"() : () -> ()
    %120 = vector.shape_cast %119 : vector<2x16x8xf32> to vector<32x8xf32>
    %121 = vector.extract_strided_slice %15 {offsets = [0, 0, 56], sizes = [2, 16, 8], strides = [1, 1, 1]} : vector<2x16x192xf32> to vector<2x16x8xf32>
    %122 = vector.extract_strided_slice %15 {offsets = [0, 0, 120], sizes = [2, 16, 8], strides = [1, 1, 1]} : vector<2x16x192xf32> to vector<2x16x8xf32>
    %123 = vector.extract_strided_slice %15 {offsets = [0, 0, 184], sizes = [2, 16, 8], strides = [1, 1, 1]} : vector<2x16x192xf32> to vector<2x16x8xf32>
    "tpu.trace_start"() <{level = 10 : i32, message = "btd,bsd->bts"}> : () -> ()
    %cst_36 = arith.constant dense<0.000000e+00> : vector<2x16x16xf32>
    %124 = tpu.matmul %121, %122, %cst_36 {dimension_numbers = #tpu.dot_dimension_numbers<[2], [2], [1], [1], [0, 0, 0, 1, 1, 1], [0], [0]>} : vector<2x16x8xf32>, vector<2x16x8xf32>, vector<2x16x16xf32> -> vector<2x16x16xf32>
    "tpu.trace_stop"() : () -> ()
    %cst_37 = arith.constant dense<0xFF800000> : vector<2x16xf32>
    %125 = vector.multi_reduction <maximumf>, %124, %cst_37 [2] : vector<2x16x16xf32> to vector<2x16xf32>
    %126 = vector.shape_cast %125 : vector<2x16xf32> to vector<2x16x1xf32>
    %127 = vector.broadcast %126 : vector<2x16x1xf32> to vector<2x16x16xf32>
    %128 = arith.subf %124, %127 : vector<2x16x16xf32>
    %129 = math.exp %128 : vector<2x16x16xf32>
    %cst_38 = arith.constant dense<0.000000e+00> : vector<2x16xf32>
    %130 = vector.multi_reduction <add>, %129, %cst_38 [2] : vector<2x16x16xf32> to vector<2x16xf32>
    %131 = vector.shape_cast %130 : vector<2x16xf32> to vector<2x16x1xf32>
    %132 = vector.broadcast %131 : vector<2x16x1xf32> to vector<2x16x16xf32>
    %133 = arith.divf %129, %132 : vector<2x16x16xf32>
    "tpu.trace_start"() <{level = 10 : i32, message = "bts,bsd->btd"}> : () -> ()
    %cst_39 = arith.constant dense<0.000000e+00> : vector<2x16x8xf32>
    %134 = tpu.matmul %133, %123, %cst_39 {dimension_numbers = #tpu.dot_dimension_numbers<[2], [1], [1], [2], [0, 0, 0, 1, 1, 2], [0], [0]>} : vector<2x16x16xf32>, vector<2x16x8xf32>, vector<2x16x8xf32> -> vector<2x16x8xf32>
    "tpu.trace_stop"() : () -> ()
    %135 = vector.shape_cast %134 : vector<2x16x8xf32> to vector<32x8xf32>
    %136 = tpu.concatenate %30, %45, %60, %75, %90, %105, %120, %135 in 1 : vector<32x8xf32>, vector<32x8xf32>, vector<32x8xf32>, vector<32x8xf32>, vector<32x8xf32>, vector<32x8xf32>, vector<32x8xf32>, vector<32x8xf32> -> vector<32x64xf32>
    %c0_40 = arith.constant 0 : index
    %c0_41 = arith.constant 0 : index
    %137 = vector.load %arg4[%c0_40, %c0_41] : memref<64x64xf32, #tpu.memory_space<vmem>>, vector<64x64xf32>
    %cst_42 = arith.constant dense<0.000000e+00> : vector<32x64xf32>
    %138 = tpu.matmul %136, %137, %cst_42 {dimension_numbers = #tpu.dot_dimension_numbers<[1], [0], [0], [1], [0, 0, 1, 1], [], []>} : vector<32x64xf32>, vector<64x64xf32>, vector<32x64xf32> -> vector<32x64xf32>
    %139 = vector.broadcast %3 : vector<1x64xf32> to vector<32x64xf32>
    %140 = arith.addf %138, %139 : vector<32x64xf32>
    %141 = arith.addf %1, %140 : vector<32x64xf32>
    %cst_43 = arith.constant dense<0.000000e+00> : vector<32xf32>
    %142 = vector.multi_reduction <add>, %141, %cst_43 [1] : vector<32x64xf32> to vector<32xf32>
    %143 = vector.shape_cast %142 : vector<32xf32> to vector<32x1xf32>
    %cst_44 = arith.constant 6.400000e+01 : f32
    %144 = vector.broadcast %cst_44 : f32 to vector<32x1xf32>
    %145 = arith.divf %143, %144 : vector<32x1xf32>
    %146 = vector.broadcast %145 : vector<32x1xf32> to vector<32x64xf32>
    %147 = arith.subf %141, %146 : vector<32x64xf32>
    %148 = arith.mulf %147, %147 : vector<32x64xf32>
    %cst_45 = arith.constant dense<0.000000e+00> : vector<32xf32>
    %149 = vector.multi_reduction <add>, %148, %cst_45 [1] : vector<32x64xf32> to vector<32xf32>
    %150 = vector.shape_cast %149 : vector<32xf32> to vector<32x1xf32>
    %cst_46 = arith.constant 6.400000e+01 : f32
    %151 = vector.broadcast %cst_46 : f32 to vector<32x1xf32>
    %152 = arith.divf %150, %151 : vector<32x1xf32>
    %153 = vector.broadcast %145 : vector<32x1xf32> to vector<32x64xf32>
    %154 = arith.subf %141, %153 : vector<32x64xf32>
    %cst_47 = arith.constant 9.99999974E-6 : f32
    %155 = vector.broadcast %cst_47 : f32 to vector<32x1xf32>
    %156 = arith.addf %152, %155 : vector<32x1xf32>
    %157 = math.rsqrt %156 : vector<32x1xf32>
    %158 = vector.broadcast %157 : vector<32x1xf32> to vector<32x64xf32>
    %159 = arith.mulf %154, %158 : vector<32x64xf32>
    %160 = vector.broadcast %5 : vector<1x64xf32> to vector<32x64xf32>
    %161 = arith.mulf %159, %160 : vector<32x64xf32>
    %162 = vector.broadcast %6 : vector<1x64xf32> to vector<32x64xf32>
    %163 = arith.addf %161, %162 : vector<32x64xf32>
    %c0_48 = arith.constant 0 : index
    %c0_49 = arith.constant 0 : index
    %164 = vector.load %arg5[%c0_48, %c0_49] : memref<64x128xf32, #tpu.memory_space<vmem>>, vector<64x128xf32>
    %cst_50 = arith.constant dense<0.000000e+00> : vector<32x128xf32>
    %165 = tpu.matmul %163, %164, %cst_50 {dimension_numbers = #tpu.dot_dimension_numbers<[1], [0], [0], [1], [0, 0, 1, 1], [], []>} : vector<32x64xf32>, vector<64x128xf32>, vector<32x128xf32> -> vector<32x128xf32>
    %166 = vector.broadcast %9 : vector<1x128xf32> to vector<32x128xf32>
    %167 = arith.addf %165, %166 : vector<32x128xf32>
    %cst_51 = arith.constant 0.000000e+00 : f32
    %168 = vector.broadcast %cst_51 : f32 to vector<32x128xf32>
    %169 = arith.maximumf %167, %168 : vector<32x128xf32>
    %c0_52 = arith.constant 0 : index
    %c0_53 = arith.constant 0 : index
    %170 = vector.load %arg6[%c0_52, %c0_53] : memref<128x64xf32, #tpu.memory_space<vmem>>, vector<128x64xf32>
    %cst_54 = arith.constant dense<0.000000e+00> : vector<32x64xf32>
    %171 = tpu.matmul %169, %170, %cst_54 {dimension_numbers = #tpu.dot_dimension_numbers<[1], [0], [0], [1], [0, 0, 1, 1], [], []>} : vector<32x128xf32>, vector<128x64xf32>, vector<32x64xf32> -> vector<32x64xf32>
    %172 = vector.broadcast %4 : vector<1x64xf32> to vector<32x64xf32>
    %173 = arith.addf %171, %172 : vector<32x64xf32>
    %174 = arith.addf %163, %173 : vector<32x64xf32>
    %cst_55 = arith.constant dense<0.000000e+00> : vector<32xf32>
    %175 = vector.multi_reduction <add>, %174, %cst_55 [1] : vector<32x64xf32> to vector<32xf32>
    %176 = vector.shape_cast %175 : vector<32xf32> to vector<32x1xf32>
    %cst_56 = arith.constant 6.400000e+01 : f32
    %177 = vector.broadcast %cst_56 : f32 to vector<32x1xf32>
    %178 = arith.divf %176, %177 : vector<32x1xf32>
    %179 = vector.broadcast %178 : vector<32x1xf32> to vector<32x64xf32>
    %180 = arith.subf %174, %179 : vector<32x64xf32>
    %181 = arith.mulf %180, %180 : vector<32x64xf32>
    %cst_57 = arith.constant dense<0.000000e+00> : vector<32xf32>
    %182 = vector.multi_reduction <add>, %181, %cst_57 [1] : vector<32x64xf32> to vector<32xf32>
    %183 = vector.shape_cast %182 : vector<32xf32> to vector<32x1xf32>
    %cst_58 = arith.constant 6.400000e+01 : f32
    %184 = vector.broadcast %cst_58 : f32 to vector<32x1xf32>
    %185 = arith.divf %183, %184 : vector<32x1xf32>
    %186 = vector.broadcast %178 : vector<32x1xf32> to vector<32x64xf32>
    %187 = arith.subf %174, %186 : vector<32x64xf32>
    %cst_59 = arith.constant 9.99999974E-6 : f32
    %188 = vector.broadcast %cst_59 : f32 to vector<32x1xf32>
    %189 = arith.addf %185, %188 : vector<32x1xf32>
    %190 = math.rsqrt %189 : vector<32x1xf32>
    %191 = vector.broadcast %190 : vector<32x1xf32> to vector<32x64xf32>
    %192 = arith.mulf %187, %191 : vector<32x64xf32>
    %193 = vector.broadcast %7 : vector<1x64xf32> to vector<32x64xf32>
    %194 = arith.mulf %192, %193 : vector<32x64xf32>
    %195 = vector.broadcast %8 : vector<1x64xf32> to vector<32x64xf32>
    %196 = arith.addf %194, %195 : vector<32x64xf32>
    %197 = vector.shape_cast %196 : vector<32x64xf32> to vector<2x16x64xf32>
    %198 = vector.extract_strided_slice %197 {offsets = [0, 0, 0], sizes = [1, 16, 64], strides = [1, 1, 1]} : vector<2x16x64xf32> to vector<1x16x64xf32>
    %199 = vector.shape_cast %198 : vector<1x16x64xf32> to vector<16x64xf32>
    %200 = vector.extract_strided_slice %197 {offsets = [1, 0, 0], sizes = [1, 16, 64], strides = [1, 1, 1]} : vector<2x16x64xf32> to vector<1x16x64xf32>
    %201 = vector.shape_cast %200 : vector<1x16x64xf32> to vector<16x64xf32>
    %202 = tpu.concatenate %199, %201 in 1 : vector<16x64xf32>, vector<16x64xf32> -> vector<16x128xf32>
    %203 = vector.shape_cast %202 : vector<16x128xf32> to vector<1x16x128xf32>
    %c0_60 = arith.constant 0 : index
    %c0_61 = arith.constant 0 : index
    %c0_62 = arith.constant 0 : index
    %204 = vector.load %arg8[%c0_60, %c0_61, %c0_62] : memref<1x16x128xf32, #tpu.memory_space<vmem>>, vector<1x16x128xf32>
    tpu.vector_store %arg8[%c0_60, %c0_61, %c0_62], %203 {strides = array<i32>} : memref<1x16x128xf32, #tpu.memory_space<vmem>>, vector<1x16x128xf32>,
    return
  }
  func.func @transform_0(%arg0: i32) -> (i32, i32, i32) {
    %c0_i32 = arith.constant 0 : i32
    %c0_i32_0 = arith.constant 0 : i32
    %c0_i32_1 = arith.constant 0 : i32
    return %arg0, %c0_i32, %c0_i32_0 : i32, i32, i32
  }
  func.func @transform_1(%arg0: i32) -> (i32, i32) {
    %c0_i32 = arith.constant 0 : i32
    %c0_i32_0 = arith.constant 0 : i32
    %c0_i32_1 = arith.constant 0 : i32
    return %c0_i32, %c0_i32_0 : i32, i32
  }
  func.func @transform_2(%arg0: i32) -> (i32, i32) {
    %c0_i32 = arith.constant 0 : i32
    %c0_i32_0 = arith.constant 0 : i32
    %c0_i32_1 = arith.constant 0 : i32
    return %c0_i32, %c0_i32_0 : i32, i32
  }
  func.func @transform_3(%arg0: i32) -> (i32, i32) {
    %c0_i32 = arith.constant 0 : i32
    %c0_i32_0 = arith.constant 0 : i32
    %c0_i32_1 = arith.constant 0 : i32
    return %c0_i32, %c0_i32_0 : i32, i32
  }
  func.func @transform_4(%arg0: i32) -> (i32, i32) {
    %c0_i32 = arith.constant 0 : i32
    %c0_i32_0 = arith.constant 0 : i32
    %c0_i32_1 = arith.constant 0 : i32
    return %c0_i32, %c0_i32_0 : i32, i32
  }
  func.func @transform_5(%arg0: i32) -> (i32, i32) {
    %c0_i32 = arith.constant 0 : i32
    %c0_i32_0 = arith.constant 0 : i32
    %c0_i32_1 = arith.constant 0 : i32
    return %c0_i32, %c0_i32_0 : i32, i32
  }
  func.func @transform_6(%arg0: i32) -> (i32, i32) {
    %c0_i32 = arith.constant 0 : i32
    %c0_i32_0 = arith.constant 0 : i32
    %c0_i32_1 = arith.constant 0 : i32
    return %c0_i32, %c0_i32_0 : i32, i32
  }
  func.func @transform_7(%arg0: i32) -> (i32, i32, i32) {
    %c0_i32 = arith.constant 0 : i32
    %c0_i32_0 = arith.constant 0 : i32
    %c0_i32_1 = arith.constant 0 : i32
    return %arg0, %c0_i32, %c0_i32_0 : i32, i32, i32
  }
}

</mosaic_0001>

<bundles_post_ra>
// kernel: _forward.1
= control target key start
LH: loop header
LB: loop body
LE: loop exit
PB: predicated region body
PF: predicated region fallthrough
CT: control target
= control target key end

     0   :  { %12 = vsyncpa [#allocation3], 0  ;;  %s5976_s0 = inlined_call_operand.hbm [shape: f32[2,16,64], index: 0, kind: input, shape index: {}]   ;;  %s5977_s1 = inlined_call_operand.vmem [shape: f32[64,192], index: 1, kind: input, shape index: {}]   ;;  %s5978_s2 = inlined_call_operand.vmem [shape: f32[1,192], index: 2, kind: input, shape index: {}]   ;;  %s5979_s3 = inlined_call_operand.vmem [shape: f32[64,64], index: 3, kind: input, shape index: {}]   ;;  %s5980_s4 = inlined_call_operand.hbm [shape: f32[64,128], index: 4, kind: input, shape index: {}]   ;;  %s5981_s5 = inlined_call_operand.vmem [shape: f32[128,64], index: 5, kind: input, shape index: {}]   ;;  %s5982_s6 = inlined_call_operand.vmem [shape: f32[7,128], index: 6, kind: input, shape index: {}]   ;;  %s5983_s7 = inlined_call_operand.vmem [shape: f32[1,16,128], index: 7, kind: output, shape index: {}]  }
   0x1   :  { %13 = vsyncpa [#allocation5], 0  ;;  %s5205_s24 = smov [#allocation2]   ;;  %s5157_s28 = scalar_lea.hbm %s5976_s0, 512 }
   0x2   :  { %s19_s25 = sshll.u32 %s5205_s24, 4  ;;  %p5158_p0 = scmp.ne.s32.totalorder %s5976_s0, %s5157_s28  ;;  %s20_s25 = int_to_ptr.vmem [resolvable:$true] %s19_s25 }
   0x3   :  { %p5161_p1 = scmp.lt.u32.totalorder %s5157_s28, %s5976_s0 }
   0x5   :  { %p5163_p2 = pnand %p5161_p1, %p5158_p0 }
   0x7   :  { %5166 = shalt.err (!%p5163_p2)
}
   0x8   :  { %s5167_s10 = scalar_lea.vmem %s20_s25, 512  ;;  %p5172_p4 = scmp.lt.s32.totalorder %s20_s25, %s20_s25 }
   0x9   :  { %p5168_p3 = scmp.ne.s32.totalorder %s20_s25, %s5167_s10  ;;  %p5173_p5 = scmp.lt.s32.totalorder %s5167_s10, %s5167_s10 }
   0xb   :  { %p5174_p6 = por %p5173_p5, %p5172_p4 }
   0xd   :  { %p5175_p7 = pnand %p5174_p6, %p5168_p3 }
   0xf   :  { %5178 = shalt.err (!%p5175_p7)
}
  0x10   :  { %s5206_s11 = smov 128   ;;  %s5207_s12 = smov 8  }
  0x11   :  { %25 = dma.hbm_to_vmem [thread:$0]  %s5976_s0, 512, %s20_s25, [#allocation3], %s5206_s11, %s5206_s11, %s5207_s12  }
  0x12   :  { %s5208_s15 = smov [#allocation4]   ;;  %s5179_s19 = scalar_lea.hbm %s5980_s4, 1024 }
  0x13   :  { %s37_s16 = sshll.u32 %s5208_s15, 4  ;;  %p5180_p8 = scmp.ne.s32.totalorder %s5980_s4, %s5179_s19  ;;  %s38_s16 = int_to_ptr.vmem [resolvable:$true] %s37_s16 }
  0x14   :  { %p5183_p9 = scmp.lt.u32.totalorder %s5179_s19, %s5980_s4 }
  0x16   :  { %p5185_p10 = pnand %p5183_p9, %p5180_p8 }
  0x18   :  { %5188 = shalt.err (!%p5185_p10)
}
  0x19   :  { %s5189_s24 = scalar_lea.vmem %s38_s16, 1024  ;;  %p5194_p12 = scmp.lt.s32.totalorder %s38_s16, %s38_s16 }
  0x1a   :  { %p5190_p11 = scmp.ne.s32.totalorder %s38_s16, %s5189_s24  ;;  %p5195_p13 = scmp.lt.s32.totalorder %s5189_s24, %s5189_s24 }
  0x1c   :  { %p5196_p0 = por %p5195_p13, %p5194_p12 }
  0x1e   :  { %p5197_p1 = pnand %p5196_p0, %p5190_p11 }
  0x20   :  { %5200 = shalt.err (!%p5197_p1)
}
  0x21   :  { %43 = dma.hbm_to_vmem [thread:$0]  %s5980_s4, 1024, %s38_s16, [#allocation5], %s5206_s11, %s5206_s11, %s5207_s12  }
  0x22   :  { %5201 = dma.done.wait [#allocation3], 512  }
  0x23   :  { %5202 = vsyncadd [#allocation3], 4294966784 }
  0x24   :  { %5203 = dma.done.wait [#allocation5], 1024  }
  0x25   :  { %5204 = vsyncadd [#allocation5], 4294966272  ;;  %v5209_v0 = vmov 0.0   ;;  %v60_v1 = vld [vmem:[%s5977_s1 + $0x8] sm:$0xff]  ;;  %v62_v2 = vld [vmem:[%s5977_s1 + $0x18] sm:$0xff]  ;;  %vm87_vm0 = vcmask 523264   ;;  %v77_v29 = vlaneseq }
  0x26   :  { %164 = vmatprep.mubr.f32.mxu0 %v5209_v0  ;;  %v59_v3 = vld [vmem:[%s5977_s1] sm:$0xff]  ;;  %v4600_v4 = vpack.c.bf16 %v62_v2, %v60_v1  ;;  %v61_v5 = vld [vmem:[%s5977_s1 + $0x10] sm:$0xff]  ;;  %v64_v6 = vld [vmem:[%s5977_s1 + $0x28] sm:$0xff]  ;;  %vm195_vm1 = vcmask 64512   ;;  %vm368_vm3 = vcmask 130048   ;;  %s5211_s11 = smov 56  }
  0x27   :  { %v66_v7 = vld [vmem:[%s5977_s1 + $0x38] sm:$0xff]  ;;  %v4602_v8 = vpack.c.bf16 %v61_v5, %v59_v3  ;;  %v63_v10 = vld [vmem:[%s5977_s1 + $0x20] sm:$0xff]  ;;  %v65_v11 = vld [vmem:[%s5977_s1 + $0x30] sm:$0xff]  ;;  %v5342_v30 = vshrl.u32 %v77_v29, 7  ;;  %s5212_s13 = smov 120   ;;  %s5213_s14 = smov 48  }
  0x28   :  { %v4604_v9 = vpack.c.bf16 %v66_v7, %v64_v6  ;;  %v68_v12 = vld [vmem:[%s5977_s1 + $0x48] sm:$0xff]  ;;  %4601 = vmatprep.subr.bf16.mxu0 %v4600_v4  ;;  %v70_v13 = vld [vmem:[%s5977_s1 + $0x58] sm:$0xff]  ;;  %v4606_v14 = vpack.c.bf16 %v65_v11, %v63_v10  ;;  %v67_v16 = vld [vmem:[%s5977_s1 + $0x40] sm:$0xff]  ;;  %s5214_s15 = smov 112   ;;  %s5215_s16 = smov 40   ;;  %vm3499_vm4 = vcmask 195584  }
  0x29   :  { %4603 = vmatpush1.bf16.msra.mxu0 %v4602_v8  ;;  %v4608_v15 = vpack.c.bf16 %v70_v13, %v68_v12  ;;  %v69_v17 = vld [vmem:[%s5977_s1 + $0x50] sm:$0xff]  ;;  %v72_v18 = vld [vmem:[%s5977_s1 + $0x68] sm:$0xff]  ;;  %v74_v19 = vld [vmem:[%s5977_s1 + $0x78] sm:$0xff]  ;;  %v79_v31 = vsub.s32 0, %v5342_v30  ;;  %v83_v34 = vsub.s32 1, %v5342_v30  ;;  %s5216_s17 = smov 104  }
  0x2a   :  { %4605 = vmatprep.subr.bf16.mxu0 %v4604_v9  ;;  %v4610_v20 = vpack.c.bf16 %v69_v17, %v67_v16  ;;  %v4612_v21 = vpack.c.bf16 %v74_v19, %v72_v18  ;;  %v71_v22 = vld [vmem:[%s5977_s1 + $0x60] sm:$0xff]  ;;  %v73_v23 = vld [vmem:[%s5977_s1 + $0x70] sm:$0xff]  ;;  %v55_v26 = vld [vmem:[#allocation2 + $0x8] sm:$0xff]  ;;  %s5217_s18 = smov 32   ;;  %s5218_s19 = smov 96   ;;  %vm3504_vm5 = vcmask 261120  }
  0x2b   :  { %v4614_v24 = vpack.c.bf16 %v73_v23, %v71_v22  ;;  %v54_v25 = vld [vmem:[#allocation2] sm:$0xff]  ;;  %v56_v27 = vld [vmem:[#allocation2 + $0x10] sm:$0xff]  ;;  %v57_v28 = vld [vmem:[#allocation2 + $0x18] sm:$0xff]  ;;  %s5219_s20 = smov 24   ;;  %s5220_s21 = smov 88   ;;  %vm3509_vm6 = vcmask 326656  }
  0x2c   :  { %v75_v32 = vld [vmem:[%s5978_s2] sm:$0x3]  ;;  %s5210_s2 = smov 64   ;;  %vm5383_vm2 = vmpackc.low %vm195_vm1, %vm195_vm1  ;;  %s5221_s22 = smov 16   ;;  %vm3514_vm7 = vcmask 392192   ;;  %vm3519_vm8 = vcmask 457728  }
  0x2d   :  { %4607 = vmatpush1.bf16.msra.mxu0 %v4606_v14  ;;  %v80_v33 = vrot.slane %v75_v32, %v79_v31  ;;  %v84_v38 = vrot.slane %v75_v32, %v83_v34  ;;  %s5222_s23 = smov 80   ;;  %s5223_s24 = smov 72  }
  0x2e   :  { %4609 = vmatprep.subr.bf16.mxu0 %v4608_v15 }
  0x31   :  { %4611 = vmatpush1.bf16.msra.mxu0 %v4610_v20 }
  0x32   :  { %4613 = vmatprep.subr.bf16.mxu0 %v4612_v21 }
  0x35   :  { %4615 = vmatpush1.bf16.msra.mxu0 %v4614_v24 }
  0x38   :  { %4014 = vmatmul.mubr.msk.f32.vlgmr.msra.gmra.mrb[0].mxu0 %vm87_vm0, %v54_v25 }
  0x39   :  { %170 = vmatprep.mubr.f32.mxu0 %v5209_v0 }
  0x3c   :  { %4015 = vmatmul.mubr.msk.f32.gmra.mrb[2].mxu0 %vm87_vm0, %v55_v26 }
  0x3d   :  { %176 = vmatprep.mubr.f32.mxu0 %v5209_v0 }
  0x40   :  { %4016 = vmatmul.mubr.msk.f32.gmra.mrb[4].mxu0 %vm87_vm0, %v56_v27 }
  0x41   :  { %182 = vmatprep.mubr.f32.mxu0 %v5209_v0 }
  0x44   :  { %4017 = vmatmul.mubr.msk.f32.gmra.mrb[6].mxu0 %vm87_vm0, %v57_v28 }
 0x10b   :  { %v166_v35 = vpop.f32.mrb[0].mxu0 }
 0x10c   :  { %v5351_v36 = vadd.f32 %v166_v35, %v80_v33  ;;  %v168_v37 = vpop.f32.mrb[1].mxu0 }
 0x10d   :  { %v169_v42 = vadd.f32 %v168_v37, %v84_v38 }
 0x10e   :  { %4298 = vmatprep.mubr.msk.f32.mxu1 %vm195_vm1, %v5351_v36 }
 0x10f   :  { %v172_v39 = vpop.f32.mrb[2].mxu0 }
 0x110   :  { %v5357_v40 = vadd.f32 %v172_v39, %v80_v33  ;;  %v174_v41 = vpop.f32.mrb[3].mxu0 }
 0x111   :  { %v175_v43 = vadd.f32 %v174_v41, %v84_v38 }
 0x112   :  { %v5361_v44 = vpack.i.bf16 %v5357_v40, %v5351_v36 }
 0x113   :  { %v178_v45 = vpop.f32.mrb[4].mxu0  ;;  %v4628_v46 = vpack.c.bf16 %v175_v43, %v169_v42  ;;  %v5363_v47 = vpack.i.bf16 %v175_v43, %v169_v42 }
 0x114   :  { %4860 = vrot.lane.b32.xlu0 %v5361_v44, %s5210_s2  ;;  %v180_v48 = vpop.f32.mrb[5].mxu0  ;;  %v5367_v49 = vadd.f32 %v178_v45, %v80_v33 }
 0x115   :  { %v181_v50 = vadd.f32 %v180_v48, %v84_v38 }
 0x117   :  { %v184_v51 = vpop.f32.mrb[6].mxu0 }
 0x118   :  { %v5369_v52 = vadd.f32 %v184_v51, %v80_v33  ;;  %v186_v53 = vpop.f32.mrb[7].mxu0 }
 0x119   :  { %v187_v54 = vadd.f32 %v186_v53, %v84_v38 }
 0x11a   :  { %v5373_v55 = vpack.i.bf16 %v5369_v52, %v5367_v49 }
 0x11b   :  { %v5375_v56 = vpack.c.bf16 %v187_v54, %v181_v50  ;;  %v5377_v57 = vpack.i.bf16 %v187_v54, %v181_v50 }
 0x11c   :  { %4865 = vrot.lane.b32.xlu0 %v5373_v55, %s5210_s2 }
 0x186   :  { %v4861_v58 = vpop.permute.xlu0 %4860 }
 0x187   :  { %v4863_v59 = vunpack.i.h.bf16 %v4861_v58  ;;  %v4862_v60 = vunpack.i.l.bf16 %v4861_v58 }
 0x189   :  { %v4616_v62 = vpack.c.bf16 %v4863_v59, %v4862_v60 }
 0x18b   :  { %4618 = vmatprep.subr.msk.bf16.mxu1 %vm5383_vm2, %v4616_v62 }
 0x18c   :  { %4621 = vmatpush3.bf16.xpose.msk.msra.mxu1 %vm5383_vm2, %v4616_v62 }
 0x18e   :  { %v4866_v63 = vpop.permute.xlu0 %4865 }
 0x18f   :  { %v4868_v0 = vunpack.i.h.bf16 %v4866_v63  ;;  %v4867_v1 = vunpack.i.l.bf16 %v4866_v63 }
 0x191   :  { %v4622_v2 = vpack.c.bf16 %v4868_v0, %v4867_v1 }
 0x193   :  { %4299 = vmatmul.mubr.msk.f32.vlgmr.msra.gmra.mrb[0].mxu1 %vm195_vm1, %v5357_v40  ;;  %4624 = vmatprep.subr.msk.bf16.mxu1 %vm5383_vm2, %v4622_v2 }
 0x194   :  { %4627 = vmatpush3.bf16.xpose.msk.msra.mxu1 %vm5383_vm2, %v4622_v2  ;;  %4305 = vmatprep.mubr.msk.f32.mxu1 %vm195_vm1, %v5367_v49 }
 0x195   :  { %4629 = vmatprep.subr.bf16.mxu1 %v4628_v46 }
 0x19b   :  { %4306 = vmatmul.mubr.msk.f32.vlgmr.msra.gmra.mrb[2].mxu1 %vm195_vm1, %v5369_v52 }
 0x19c   :  { %4631 = vmatpush3.bf16.msra.mxu1 %v4628_v46 }
 0x19d   :  { %4633 = vmatprep.subr.bf16.mxu1 %v5375_v56 }
 0x266   :  { %v4300_v3 = vpop.f32.mrb[0].mxu1 }
 0x267   :  { %v270_v4 = vpop.f32.mrb[1].mxu1  ;;  %v372_v6 = vsel %vm368_vm3, %v4300_v3, -inf }
 0x268   :  { %v369_v5 = vsel %vm368_vm3, %v270_v4, -inf }
 0x269   :  { %370 = vmax.xlane.f32.xlu1 %v369_v5 }
 0x26d   :  { %373 = vmax.xlane.f32.xlu1 %v372_v6 }
 0x26e   :  { %v4307_v7 = vpop.f32.mrb[2].mxu1 }
 0x26f   :  { %v359_v8 = vpop.f32.mrb[3].mxu1  ;;  %v378_v9 = vsel %vm368_vm3, %v4307_v7, -inf }
 0x270   :  { %v375_v10 = vsel %vm368_vm3, %v359_v8, -inf }
 0x271   :  { %379 = vmax.xlane.f32.xlu1 %v378_v9  ;;  %376 = vmax.xlane.f32.xlu0 %v375_v10 }
 0x282   :  { %4870 = vrot.lane.b32.xlu1 %v5361_v44, %s5211_s11 }
 0x286   :  { %575 = vrot.lane.b32.xlu1 %v5351_v36, %s5212_s13 }
 0x287   :  { %4875 = vrot.lane.b32.xlu0 %v5373_v55, %s5211_s11 }
 0x28a   :  { %577 = vrot.lane.b32.xlu1 %v5357_v40, %s5212_s13 }
 0x28e   :  { %666 = vrot.lane.b32.xlu1 %v5367_v49, %s5212_s13 }
 0x2f6   :  { %v371_v11 = vpop.xlane.xlu1 %370 }
 0x2f7   :  { %v381_v12 = vsub.f32 %v270_v4, %v371_v11 }
 0x2f9   :  { %v385_v15 = vmul.f32 1.442695, %v381_v12 }
 0x2fa   :  { %v374_v13 = vpop.xlane.xlu1 %373 }
 0x2fb   :  { %v382_v14 = vsub.f32 %v4300_v3, %v374_v13 }
 0x2fd   :  { %v387_v16 = vmul.f32 1.442695, %v382_v14 }
 0x2fe   :  { %v380_v17 = vpop.xlane.xlu1 %379  ;;  %v377_v18 = vpop.xlane.xlu0 %376 }
 0x2ff   :  { %5009 = vpow2.f32 %v387_v16  ;;  %v384_v19 = vsub.f32 %v4307_v7, %v380_v17  ;;  %v383_v21 = vsub.f32 %v359_v8, %v377_v18 }
 0x300   :  { %5011 = vpow2.f32 %v385_v15 }
 0x301   :  { %v391_v20 = vmul.f32 1.442695, %v384_v19  ;;  %v389_v25 = vmul.f32 1.442695, %v383_v21 }
 0x302   :  { %v4871_v22 = vpop.permute.xlu1 %4870  ;;  %v4876_v48 = vpop.permute.xlu0 %4875 }
 0x303   :  { %v4873_v23 = vunpack.i.h.bf16 %v4871_v22  ;;  %v4872_v24 = vunpack.i.l.bf16 %v4871_v22  ;;  %5013 = vpow2.f32 %v391_v20  ;;  %v4878_v54 = vunpack.i.h.bf16 %v4876_v48 }
 0x304   :  { %5015 = vpow2.f32 %v389_v25  ;;  %v4877_v58 = vunpack.i.l.bf16 %v4876_v48 }
 0x305   :  { %v4636_v26 = vpack.c.bf16 %v4873_v23, %v4872_v24 }
 0x306   :  { %v576_v27 = vpop.permute.xlu1 %575  ;;  %v4642_v62 = vpack.c.bf16 %v4878_v54, %v4877_v58 }
 0x307   :  { %4638 = vmatprep.subr.msk.bf16.mxu0 %vm5383_vm2, %v4636_v26  ;;  %4326 = vmatprep.mubr.msk.f32.mxu0 %vm195_vm1, %v576_v27 }
 0x308   :  { %4641 = vmatpush3.bf16.xpose.msk.msra.mxu0 %vm5383_vm2, %v4636_v26 }
 0x309   :  { %v5010_v28 = vpop.eup %5009 }
 0x30a   :  { %v396_v29 = vsel %vm368_vm3, %v5010_v28, 0.0  ;;  %v5012_v32 = vpop.eup %5011  ;;  %v578_v33 = vpop.permute.xlu1 %577 }
 0x30b   :  { %397 = vadd.xlane.f32.xlu1 %v396_v29  ;;  %v393_v35 = vsel %vm368_vm3, %v5012_v32, 0.0 }
 0x30d   :  { %v5014_v37 = vpop.eup %5013 }
 0x30e   :  { %v402_v38 = vsel %vm368_vm3, %v5014_v37, 0.0  ;;  %v5016_v39 = vpop.eup %5015  ;;  %v667_v42 = vpop.permute.xlu1 %666 }
 0x30f   :  { %394 = vadd.xlane.f32.xlu1 %v393_v35  ;;  %4327 = vmatmul.mubr.msk.f32.vlgmr.msra.gmra.mrb[8].mxu0 %vm195_vm1, %v578_v33  ;;  %v399_v41 = vsel %vm368_vm3, %v5016_v39, 0.0 }
 0x313   :  { %403 = vadd.xlane.f32.xlu1 %v402_v38 }
 0x317   :  { %400 = vadd.xlane.f32.xlu1 %v399_v41 }
 0x328   :  { %668 = vrot.lane.b32.xlu1 %v5369_v52, %s5212_s13 }
 0x398   :  { %v398_v43 = vpop.xlane.xlu1 %397 }
 0x399   :  { %5017 = vrcp.f32 %v398_v43 }
 0x39c   :  { %v395_v45 = vpop.xlane.xlu1 %394 }
 0x39d   :  { %5019 = vrcp.f32 %v395_v45 }
 0x3a0   :  { %v404_v46 = vpop.xlane.xlu1 %403 }
 0x3a1   :  { %5021 = vrcp.f32 %v404_v46 }
 0x3a3   :  { %v5018_v51 = vpop.eup %5017 }
 0x3a4   :  { %v401_v50 = vpop.xlane.xlu1 %400  ;;  %v408_v60 = vmul.f32 %v5018_v51, %v5010_v28 }
 0x3a5   :  { %5023 = vrcp.f32 %v401_v50 }
 0x3a7   :  { %v5020_v53 = vpop.eup %5019 }
 0x3a8   :  { %v406_v59 = vmul.f32 %v5020_v53, %v5012_v32  ;;  %v669_v3 = vpop.permute.xlu1 %668 }
 0x3aa   :  { %4312 = vmatprep.mubr.msk.f32.mxu1 %vm368_vm3, %v406_v59 }
 0x3ab   :  { %4313 = vmatmul.mubr.msk.f32.vlgmr.msra.gmra.mrb[4].mxu1 %vm368_vm3, %v408_v60  ;;  %v5022_v63 = vpop.eup %5021 }
 0x3ac   :  { %4635 = vmatpush3.bf16.msra.mxu1 %v5375_v56  ;;  %v412_v2 = vmul.f32 %v5022_v63, %v5014_v37 }
 0x3ad   :  { %4644 = vmatprep.subr.msk.bf16.mxu1 %vm5383_vm2, %v4642_v62 }
 0x3af   :  { %v5024_v0 = vpop.eup %5023 }
 0x3b0   :  { %v410_v1 = vmul.f32 %v5024_v0, %v5016_v39 }
 0x3b2   :  { %4319 = vmatprep.mubr.msk.f32.mxu1 %vm368_vm3, %v410_v1 }
 0x3b3   :  { %4320 = vmatmul.mubr.msk.f32.vlgmr.msra.gmra.mrb[6].mxu1 %vm368_vm3, %v412_v2 }
 0x3b4   :  { %4333 = vmatprep.mubr.msk.f32.mxu1 %vm195_vm1, %v667_v42 }
 0x3b5   :  { %4647 = vmatpush3.bf16.xpose.msk.msra.mxu1 %vm5383_vm2, %v4642_v62 }
 0x3bc   :  { %4334 = vmatmul.mubr.msk.f32.vlgmr.msra.gmra.mrb[8].mxu1 %vm195_vm1, %v669_v3 }
 0x3e2   :  { %v4328_v56 = vpop.f32.mrb[8].mxu0 }
 0x3e3   :  { %v657_v4 = vpop.f32.mrb[9].mxu0  ;;  %v760_v5 = vsel %vm368_vm3, %v4328_v56, -inf }
 0x3e4   :  { %761 = vmax.xlane.f32.xlu1 %v760_v5  ;;  %v757_v6 = vsel %vm368_vm3, %v657_v4, -inf }
 0x3e5   :  { %758 = vmax.xlane.f32.xlu0 %v757_v6 }
 0x471   :  { %v762_v13 = vpop.xlane.xlu1 %761 }
 0x472   :  { %v759_v7 = vpop.xlane.xlu0 %758  ;;  %v770_v15 = vsub.f32 %v4328_v56, %v762_v13 }
 0x473   :  { %v769_v8 = vsub.f32 %v657_v4, %v759_v7 }
 0x474   :  { %v775_v18 = vmul.f32 1.442695, %v770_v15 }
 0x475   :  { %v773_v9 = vmul.f32 1.442695, %v769_v8 }
 0x477   :  { %5025 = vpow2.f32 %v773_v9 }
 0x478   :  { %5027 = vpow2.f32 %v775_v18 }
 0x47e   :  { %v5441_v10 = vpop.f32.mrb[4].mxu1 }
 0x47f   :  { %v5443_v11 = vpop.f32.mrb[5].mxu1 }
 0x481   :  { %v5026_v12 = vpop.eup %5025 }
 0x482   :  { %v781_v14 = vsel %vm368_vm3, %v5026_v12, 0.0  ;;  %v5028_v23 = vpop.eup %5027 }
 0x483   :  { %782 = vadd.xlane.f32.xlu1 %v781_v14  ;;  %v784_v24 = vsel %vm368_vm3, %v5028_v23, 0.0 }
 0x486   :  { %v5446_v16 = vpop.f32.mrb[6].mxu1 }
 0x487   :  { %v5448_v17 = vpop.f32.mrb[7].mxu1 }
 0x48f   :  { %v4335_v19 = vpop.f32.mrb[8].mxu1 }
 0x490   :  { %v748_v20 = vpop.f32.mrb[9].mxu1  ;;  %v766_v22 = vsel %vm368_vm3, %v4335_v19, -inf }
 0x491   :  { %v763_v21 = vsel %vm368_vm3, %v748_v20, -inf }
 0x492   :  { %764 = vmax.xlane.f32.xlu0 %v763_v21 }
 0x494   :  { %4880 = vrot.lane.b32.xlu1 %v5363_v47, %s5212_s13 }
 0x496   :  { %767 = vmax.xlane.f32.xlu0 %v766_v22 }
 0x498   :  { %4890 = vrot.lane.b32.xlu1 %v5361_v44, %s5213_s14 }
 0x49a   :  { %785 = vadd.xlane.f32.xlu0 %v784_v24 }
 0x49c   :  { %4895 = vrot.lane.b32.xlu1 %v5373_v55, %s5213_s14 }
 0x4a0   :  { %981 = vrot.lane.b32.xlu1 %v5357_v40, %s5214_s15 }
 0x4b0   :  { %4885 = vrot.lane.b32.xlu0 %v5377_v57, %s5212_s13 }
 0x510   :  { %v783_v25 = vpop.xlane.xlu1 %782 }
 0x511   :  { %5029 = vrcp.f32 %v783_v25 }
 0x514   :  { %v4881_v26 = vpop.permute.xlu1 %4880 }
 0x515   :  { %v4883_v27 = vunpack.i.h.bf16 %v4881_v26  ;;  %v4882_v28 = vunpack.i.l.bf16 %v4881_v26 }
 0x517   :  { %v4648_v29 = vpack.c.bf16 %v4883_v27, %v4882_v28 }
 0x518   :  { %v4891_v32 = vpop.permute.xlu1 %4890 }
 0x519   :  { %v4893_v33 = vunpack.i.h.bf16 %v4891_v32  ;;  %v4892_v35 = vunpack.i.l.bf16 %v4891_v32  ;;  %4649 = vmatprep.subr.bf16.mxu0 %v4648_v29 }
 0x51a   :  { %4651 = vmatpush3.bf16.msra.mxu0 %v4648_v29 }
 0x51b   :  { %v5030_v37 = vpop.eup %5029  ;;  %v4656_v38 = vpack.c.bf16 %v4893_v33, %v4892_v35 }
 0x51c   :  { %v794_v39 = vmul.f32 %v5030_v37, %v5026_v12  ;;  %v4896_v51 = vpop.permute.xlu1 %4895 }
 0x51d   :  { %4658 = vmatprep.subr.msk.bf16.mxu0 %vm5383_vm2, %v4656_v38  ;;  %v4898_v54 = vunpack.i.h.bf16 %v4896_v51  ;;  %v4897_v58 = vunpack.i.l.bf16 %v4896_v51 }
 0x51e   :  { %4340 = vmatprep.mubr.msk.f32.mxu0 %vm368_vm3, %v794_v39 }
 0x51f   :  { %v765_v41 = vpop.xlane.xlu0 %764  ;;  %v4662_v1 = vpack.c.bf16 %v4898_v54, %v4897_v58 }
 0x520   :  { %v771_v42 = vsub.f32 %v748_v20, %v765_v41  ;;  %v982_v5 = vpop.permute.xlu1 %981 }
 0x522   :  { %v777_v43 = vmul.f32 1.442695, %v771_v42 }
 0x523   :  { %v768_v45 = vpop.xlane.xlu0 %767 }
 0x524   :  { %5031 = vpow2.f32 %v777_v43  ;;  %v772_v46 = vsub.f32 %v4335_v19, %v768_v45 }
 0x526   :  { %v779_v48 = vmul.f32 1.442695, %v772_v46 }
 0x527   :  { %v786_v50 = vpop.xlane.xlu0 %785 }
 0x528   :  { %5033 = vpow2.f32 %v779_v48 }
 0x529   :  { %5035 = vrcp.f32 %v786_v50 }
 0x52b   :  { %v4886_v53 = vpop.permute.xlu0 %4885 }
 0x52c   :  { %v4888_v59 = vunpack.i.h.bf16 %v4886_v53  ;;  %v4887_v60 = vunpack.i.l.bf16 %v4886_v53 }
 0x52e   :  { %v5032_v62 = vpop.eup %5031  ;;  %v4652_v63 = vpack.c.bf16 %v4888_v59, %v4887_v60 }
 0x52f   :  { %v787_v0 = vsel %vm368_vm3, %v5032_v62, 0.0 }
 0x530   :  { %788 = vadd.xlane.f32.xlu1 %v787_v0  ;;  %4653 = vmatprep.subr.bf16.mxu1 %v4652_v63 }
 0x531   :  { %4655 = vmatpush3.bf16.msra.mxu1 %v4652_v63 }
 0x532   :  { %v5034_v2 = vpop.eup %5033  ;;  %4664 = vmatprep.subr.msk.bf16.mxu1 %vm5383_vm2, %v4662_v1 }
 0x533   :  { %v5036_v3 = vpop.eup %5035  ;;  %v790_v56 = vsel %vm368_vm3, %v5034_v2, 0.0 }
 0x534   :  { %791 = vadd.xlane.f32.xlu0 %v790_v56  ;;  %v796_v4 = vmul.f32 %v5036_v3, %v5028_v23 }
 0x536   :  { %4341 = vmatmul.mubr.msk.f32.vlgmr.msra.gmra.mrb[10].mxu0 %vm368_vm3, %v796_v4 }
 0x537   :  { %4661 = vmatpush3.bf16.xpose.msk.msra.mxu0 %vm5383_vm2, %v4656_v38 }
 0x541   :  { %1072 = vrot.lane.b32.xlu1 %v5369_v52, %s5214_s15 }
 0x54a   :  { %979 = vrot.lane.b32.xlu0 %v5351_v36, %s5214_s15 }
 0x54e   :  { %1070 = vrot.lane.b32.xlu0 %v5367_v49, %s5214_s15 }
 0x5bd   :  { %v789_v6 = vpop.xlane.xlu1 %788 }
 0x5be   :  { %5037 = vrcp.f32 %v789_v6 }
 0x5c1   :  { %v792_v7 = vpop.xlane.xlu0 %791  ;;  %v1073_v18 = vpop.permute.xlu1 %1072 }
 0x5c2   :  { %5039 = vrcp.f32 %v792_v7 }
 0x5c5   :  { %v980_v8 = vpop.permute.xlu0 %979 }
 0x5c6   :  { %4354 = vmatprep.mubr.msk.f32.mxu0 %vm195_vm1, %v980_v8 }
 0x5c7   :  { %4355 = vmatmul.mubr.msk.f32.vlgmr.msra.gmra.mrb[12].mxu0 %vm195_vm1, %v982_v5 }
 0x5c8   :  { %v5038_v9 = vpop.eup %5037 }
 0x5c9   :  { %v798_v12 = vmul.f32 %v5038_v9, %v5032_v62  ;;  %v1071_v15 = vpop.permute.xlu0 %1070 }
 0x5cb   :  { %4347 = vmatprep.mubr.msk.f32.mxu1 %vm368_vm3, %v798_v12 }
 0x5cc   :  { %v5040_v13 = vpop.eup %5039 }
 0x5cd   :  { %v800_v14 = vmul.f32 %v5040_v13, %v5034_v2 }
 0x5cf   :  { %4348 = vmatmul.mubr.msk.f32.vlgmr.msra.gmra.mrb[10].mxu1 %vm368_vm3, %v800_v14 }
 0x5d0   :  { %4667 = vmatpush3.bf16.xpose.msk.msra.mxu1 %vm5383_vm2, %v4662_v1  ;;  %4361 = vmatprep.mubr.msk.f32.mxu1 %vm195_vm1, %v1071_v15 }
 0x5d7   :  { %4362 = vmatmul.mubr.msk.f32.vlgmr.msra.gmra.mrb[12].mxu1 %vm195_vm1, %v1073_v18 }
 0x609   :  { %v5487_v19 = vpop.f32.mrb[10].mxu0 }
 0x60a   :  { %v5489_v20 = vpop.f32.mrb[11].mxu0 }
 0x69a   :  { %v4356_v21 = vpop.f32.mrb[12].mxu0 }
 0x69b   :  { %v1061_v22 = vpop.f32.mrb[13].mxu0  ;;  %v1164_v23 = vsel %vm368_vm3, %v4356_v21, -inf }
 0x69c   :  { %1165 = vmax.xlane.f32.xlu1 %v1164_v23  ;;  %v1161_v24 = vsel %vm368_vm3, %v1061_v22, -inf }
 0x69d   :  { %1162 = vmax.xlane.f32.xlu0 %v1161_v24 }
 0x6a2   :  { %v5493_v25 = vpop.f32.mrb[10].mxu1 }
 0x6a3   :  { %v5495_v26 = vpop.f32.mrb[11].mxu1 }
 0x6aa   :  { %v4363_v27 = vpop.f32.mrb[12].mxu1 }
 0x6ab   :  { %v1152_v28 = vpop.f32.mrb[13].mxu1  ;;  %v1170_v32 = vsel %vm368_vm3, %v4363_v27, -inf }
 0x6ac   :  { %v1167_v29 = vsel %vm368_vm3, %v1152_v28, -inf }
 0x6ad   :  { %1168 = vmax.xlane.f32.xlu0 %v1167_v29 }
 0x6b1   :  { %1171 = vmax.xlane.f32.xlu0 %v1170_v32 }
 0x729   :  { %v1166_v33 = vpop.xlane.xlu1 %1165 }
 0x72a   :  { %v1174_v35 = vsub.f32 %v4356_v21, %v1166_v33  ;;  %v1163_v37 = vpop.xlane.xlu0 %1162 }
 0x72b   :  { %v1173_v38 = vsub.f32 %v1061_v22, %v1163_v37 }
 0x72c   :  { %v1179_v39 = vmul.f32 1.442695, %v1174_v35 }
 0x72d   :  { %v1177_v41 = vmul.f32 1.442695, %v1173_v38 }
 0x72e   :  { %5041 = vpow2.f32 %v1179_v39 }
 0x72f   :  { %5043 = vpow2.f32 %v1177_v41 }
 0x738   :  { %v5042_v42 = vpop.eup %5041 }
 0x739   :  { %v5044_v43 = vpop.eup %5043  ;;  %v1188_v45 = vsel %vm368_vm3, %v5042_v42, 0.0 }
 0x73a   :  { %1189 = vadd.xlane.f32.xlu0 %v1188_v45  ;;  %v1185_v46 = vsel %vm368_vm3, %v5044_v43, 0.0  ;;  %v1169_v48 = vpop.xlane.xlu0 %1168 }
 0x73b   :  { %1186 = vadd.xlane.f32.xlu1 %v1185_v46  ;;  %v1175_v54 = vsub.f32 %v1152_v28, %v1169_v48 }
 0x73d   :  { %v1181_v58 = vmul.f32 1.442695, %v1175_v54 }
 0x73e   :  { %v1172_v50 = vpop.xlane.xlu0 %1171 }
 0x73f   :  { %v1176_v51 = vsub.f32 %v4363_v27, %v1172_v50 }
 0x741   :  { %v1183_v53 = vmul.f32 1.442695, %v1176_v51 }
 0x743   :  { %5045 = vpow2.f32 %v1183_v53 }
 0x744   :  { %5047 = vpow2.f32 %v1181_v58 }
 0x74c   :  { %4900 = vrot.lane.b32.xlu1 %v5363_v47, %s5214_s15 }
 0x74d   :  { %v5046_v59 = vpop.eup %5045 }
 0x74e   :  { %v1194_v60 = vsel %vm368_vm3, %v5046_v59, 0.0  ;;  %v5048_v62 = vpop.eup %5047 }
 0x74f   :  { %v1191_v63 = vsel %vm368_vm3, %v5048_v62, 0.0 }
 0x750   :  { %4910 = vrot.lane.b32.xlu1 %v5361_v44, %s5215_s16  ;;  %4905 = vrot.lane.b32.xlu0 %v5377_v57, %s5214_s15 }
 0x754   :  { %4915 = vrot.lane.b32.xlu1 %v5373_v55, %s5215_s16 }
 0x758   :  { %1381 = vrot.lane.b32.xlu1 %v5357_v40, %s5216_s17 }
 0x76f   :  { %1195 = vadd.xlane.f32.xlu0 %v1194_v60 }
 0x77c   :  { %1192 = vadd.xlane.f32.xlu1 %v1191_v63 }
 0x785   :  { %1379 = vrot.lane.b32.xlu0 %v5351_v36, %s5216_s17 }
 0x789   :  { %1470 = vrot.lane.b32.xlu0 %v5367_v49, %s5216_s17 }
 0x78d   :  { %1472 = vrot.lane.b32.xlu1 %v5369_v52, %s5216_s17 }
 0x7c7   :  { %v1190_v0 = vpop.xlane.xlu0 %1189 }
 0x7c8   :  { %5049 = vrcp.f32 %v1190_v0  ;;  %v1187_v1 = vpop.xlane.xlu1 %1186 }
 0x7c9   :  { %5051 = vrcp.f32 %v1187_v1 }
 0x7cb   :  { %v4906_v2 = vpop.permute.xlu0 %4905 }
 0x7cc   :  { %v4908_v3 = vunpack.i.h.bf16 %v4906_v2  ;;  %v4907_v56 = vunpack.i.l.bf16 %v4906_v2  ;;  %v4901_v4 = vpop.permute.xlu1 %4900 }
 0x7cd   :  { %v4903_v5 = vunpack.i.h.bf16 %v4901_v4  ;;  %v4902_v6 = vunpack.i.l.bf16 %v4901_v4 }
 0x7ce   :  { %v4672_v7 = vpack.c.bf16 %v4908_v3, %v4907_v56 }
 0x7cf   :  { %v4668_v8 = vpack.c.bf16 %v4903_v5, %v4902_v6 }
 0x7d0   :  { %v4911_v9 = vpop.permute.xlu1 %4910  ;;  %4673 = vmatprep.subr.bf16.mxu1 %v4672_v7 }
 0x7d1   :  { %v4913_v12 = vunpack.i.h.bf16 %v4911_v9  ;;  %v4912_v13 = vunpack.i.l.bf16 %v4911_v9  ;;  %4669 = vmatprep.subr.bf16.mxu0 %v4668_v8  ;;  %4675 = vmatpush3.bf16.msra.mxu1 %v4672_v7 }
 0x7d2   :  { %v5050_v14 = vpop.eup %5049  ;;  %4671 = vmatpush3.bf16.msra.mxu0 %v4668_v8 }
 0x7d3   :  { %v5052_v15 = vpop.eup %5051  ;;  %v4676_v18 = vpack.c.bf16 %v4913_v12, %v4912_v13  ;;  %v1200_v27 = vmul.f32 %v5050_v14, %v5042_v42 }
 0x7d4   :  { %v4916_v21 = vpop.permute.xlu1 %4915  ;;  %v1198_v22 = vmul.f32 %v5052_v15, %v5044_v43 }
 0x7d5   :  { %v4918_v23 = vunpack.i.h.bf16 %v4916_v21  ;;  %v4917_v24 = vunpack.i.l.bf16 %v4916_v21  ;;  %4678 = vmatprep.subr.msk.bf16.mxu0 %vm5383_vm2, %v4676_v18 }
 0x7d6   :  { %4368 = vmatprep.mubr.msk.f32.mxu0 %vm368_vm3, %v1198_v22 }
 0x7d7   :  { %v4682_v28 = vpack.c.bf16 %v4918_v23, %v4917_v24  ;;  %4369 = vmatmul.mubr.msk.f32.vlgmr.msra.gmra.mrb[14].mxu0 %vm368_vm3, %v1200_v27 }
 0x7d8   :  { %v1382_v33 = vpop.permute.xlu1 %1381 }
 0x7d9   :  { %4684 = vmatprep.subr.msk.bf16.mxu1 %vm5383_vm2, %v4682_v28 }
 0x7db   :  { %4681 = vmatpush3.bf16.xpose.msk.msra.mxu0 %vm5383_vm2, %v4676_v18 }
 0x7fc   :  { %v1196_v29 = vpop.xlane.xlu0 %1195 }
 0x7fd   :  { %5053 = vrcp.f32 %v1196_v29 }
 0x800   :  { %v1380_v32 = vpop.permute.xlu0 %1379 }
 0x801   :  { %4382 = vmatprep.mubr.msk.f32.mxu0 %vm195_vm1, %v1380_v32 }
 0x802   :  { %4383 = vmatmul.mubr.msk.f32.vlgmr.msra.gmra.mrb[16].mxu0 %vm195_vm1, %v1382_v33 }
 0x804   :  { %v1471_v42 = vpop.permute.xlu0 %1470 }
 0x807   :  { %v5054_v37 = vpop.eup %5053 }
 0x808   :  { %v1204_v41 = vmul.f32 %v5054_v37, %v5046_v59 }
 0x809   :  { %v1193_v35 = vpop.xlane.xlu1 %1192 }
 0x80a   :  { %5055 = vrcp.f32 %v1193_v35 }
 0x80d   :  { %v1473_v43 = vpop.permute.xlu1 %1472 }
 0x814   :  { %v5056_v38 = vpop.eup %5055 }
 0x815   :  { %v1202_v39 = vmul.f32 %v5056_v38, %v5048_v62 }
 0x817   :  { %4375 = vmatprep.mubr.msk.f32.mxu1 %vm368_vm3, %v1202_v39 }
 0x818   :  { %4376 = vmatmul.mubr.msk.f32.vlgmr.msra.gmra.mrb[14].mxu1 %vm368_vm3, %v1204_v41 }
 0x819   :  { %4687 = vmatpush3.bf16.xpose.msk.msra.mxu1 %vm5383_vm2, %v4682_v28  ;;  %4389 = vmatprep.mubr.msk.f32.mxu1 %vm195_vm1, %v1471_v42 }
 0x820   :  { %4390 = vmatmul.mubr.msk.f32.vlgmr.msra.gmra.mrb[16].mxu1 %vm195_vm1, %v1473_v43 }
 0x8aa   :  { %v5535_v45 = vpop.f32.mrb[14].mxu0 }
 0x8ab   :  { %v5537_v46 = vpop.f32.mrb[15].mxu0 }
 0x8d5   :  { %v4384_v48 = vpop.f32.mrb[16].mxu0 }
 0x8d6   :  { %v1461_v50 = vpop.f32.mrb[17].mxu0  ;;  %v1564_v51 = vsel %vm368_vm3, %v4384_v48, -inf }
 0x8d7   :  { %1565 = vmax.xlane.f32.xlu1 %v1564_v51  ;;  %v1561_v53 = vsel %vm368_vm3, %v1461_v50, -inf }
 0x8d8   :  { %1562 = vmax.xlane.f32.xlu0 %v1561_v53 }
 0x8eb   :  { %v5541_v54 = vpop.f32.mrb[14].mxu1 }
 0x8ec   :  { %v5543_v58 = vpop.f32.mrb[15].mxu1 }
 0x8f3   :  { %v4391_v59 = vpop.f32.mrb[16].mxu1 }
 0x8f4   :  { %v1552_v60 = vpop.f32.mrb[17].mxu1  ;;  %v1570_v63 = vsel %vm368_vm3, %v4391_v59, -inf }
 0x8f5   :  { %v1567_v62 = vsel %vm368_vm3, %v1552_v60, -inf }
 0x8f6   :  { %1568 = vmax.xlane.f32.xlu0 %v1567_v62 }
 0x8fa   :  { %1571 = vmax.xlane.f32.xlu0 %v1570_v63 }
 0x964   :  { %v1566_v0 = vpop.xlane.xlu1 %1565 }
 0x965   :  { %v1574_v1 = vsub.f32 %v4384_v48, %v1566_v0  ;;  %v1563_v2 = vpop.xlane.xlu0 %1562 }
 0x966   :  { %v1573_v3 = vsub.f32 %v1461_v50, %v1563_v2 }
 0x967   :  { %v1579_v56 = vmul.f32 1.442695, %v1574_v1 }
 0x968   :  { %v1577_v4 = vmul.f32 1.442695, %v1573_v3 }
 0x969   :  { %5057 = vpow2.f32 %v1579_v56 }
 0x96a   :  { %5059 = vpow2.f32 %v1577_v4 }
 0x973   :  { %v5058_v5 = vpop.eup %5057 }
 0x974   :  { %v5060_v6 = vpop.eup %5059  ;;  %v1588_v7 = vsel %vm368_vm3, %v5058_v5, 0.0 }
 0x975   :  { %1589 = vadd.xlane.f32.xlu0 %v1588_v7  ;;  %v1585_v8 = vsel %vm368_vm3, %v5060_v6, 0.0 }
 0x976   :  { %1586 = vadd.xlane.f32.xlu1 %v1585_v8 }
 0x983   :  { %v1569_v9 = vpop.xlane.xlu0 %1568 }
 0x984   :  { %v1575_v15 = vsub.f32 %v1552_v60, %v1569_v9 }
 0x986   :  { %v1581_v18 = vmul.f32 1.442695, %v1575_v15 }
 0x987   :  { %4920 = vrot.lane.b32.xlu1 %v5363_v47, %s5216_s17  ;;  %v1572_v12 = vpop.xlane.xlu0 %1571 }
 0x988   :  { %v1576_v13 = vsub.f32 %v4391_v59, %v1572_v12 }
 0x98a   :  { %v1583_v14 = vmul.f32 1.442695, %v1576_v13 }
 0x98b   :  { %4930 = vrot.lane.b32.xlu1 %v5361_v44, %s5217_s18  ;;  %4925 = vrot.lane.b32.xlu0 %v5377_v57, %s5216_s17 }
 0x98c   :  { %5061 = vpow2.f32 %v1583_v14 }
 0x98d   :  { %5063 = vpow2.f32 %v1581_v18 }
 0x98f   :  { %4935 = vrot.lane.b32.xlu1 %v5373_v55, %s5217_s18 }
 0x993   :  { %1781 = vrot.lane.b32.xlu1 %v5357_v40, %s5218_s19 }
 0x996   :  { %v5062_v21 = vpop.eup %5061 }
 0x997   :  { %v1594_v22 = vsel %vm368_vm3, %v5062_v21, 0.0  ;;  %v5064_v23 = vpop.eup %5063 }
 0x998   :  { %v1591_v24 = vsel %vm368_vm3, %v5064_v23, 0.0 }
 0x9aa   :  { %1595 = vadd.xlane.f32.xlu0 %v1594_v22 }
 0x9b7   :  { %1592 = vadd.xlane.f32.xlu1 %v1591_v24 }
 0x9c0   :  { %1779 = vrot.lane.b32.xlu0 %v5351_v36, %s5218_s19 }
 0x9c4   :  { %1870 = vrot.lane.b32.xlu0 %v5367_v49, %s5218_s19 }
 0x9c8   :  { %1872 = vrot.lane.b32.xlu1 %v5369_v52, %s5218_s19 }
 0xa02   :  { %v1590_v27 = vpop.xlane.xlu0 %1589 }
 0xa03   :  { %5065 = vrcp.f32 %v1590_v27  ;;  %v1587_v28 = vpop.xlane.xlu1 %1586 }
 0xa04   :  { %5067 = vrcp.f32 %v1587_v28 }
 0xa06   :  { %v4926_v29 = vpop.permute.xlu0 %4925 }
 0xa07   :  { %v4928_v32 = vunpack.i.h.bf16 %v4926_v29  ;;  %v4927_v33 = vunpack.i.l.bf16 %v4926_v29  ;;  %v4921_v35 = vpop.permute.xlu1 %4920 }
 0xa08   :  { %v4923_v37 = vunpack.i.h.bf16 %v4921_v35  ;;  %v4922_v38 = vunpack.i.l.bf16 %v4921_v35 }
 0xa09   :  { %v4692_v39 = vpack.c.bf16 %v4928_v32, %v4927_v33 }
 0xa0a   :  { %v4688_v41 = vpack.c.bf16 %v4923_v37, %v4922_v38 }
 0xa0b   :  { %v4931_v42 = vpop.permute.xlu1 %4930  ;;  %4693 = vmatprep.subr.bf16.mxu1 %v4692_v39 }
 0xa0c   :  { %v4933_v43 = vunpack.i.h.bf16 %v4931_v42  ;;  %v4932_v48 = vunpack.i.l.bf16 %v4931_v42  ;;  %4689 = vmatprep.subr.bf16.mxu0 %v4688_v41  ;;  %4695 = vmatpush3.bf16.msra.mxu1 %v4692_v39 }
 0xa0d   :  { %v5066_v50 = vpop.eup %5065  ;;  %4691 = vmatpush3.bf16.msra.mxu0 %v4688_v41 }
 0xa0e   :  { %v5068_v51 = vpop.eup %5067  ;;  %v4696_v53 = vpack.c.bf16 %v4933_v43, %v4932_v48  ;;  %v1600_v0 = vmul.f32 %v5066_v50, %v5058_v5 }
 0xa0f   :  { %v4936_v59 = vpop.permute.xlu1 %4935  ;;  %v1598_v60 = vmul.f32 %v5068_v51, %v5060_v6 }
 0xa10   :  { %v4938_v62 = vunpack.i.h.bf16 %v4936_v59  ;;  %v4937_v63 = vunpack.i.l.bf16 %v4936_v59  ;;  %4698 = vmatprep.subr.msk.bf16.mxu0 %vm5383_vm2, %v4696_v53 }
 0xa11   :  { %4396 = vmatprep.mubr.msk.f32.mxu0 %vm368_vm3, %v1598_v60 }
 0xa12   :  { %v4702_v1 = vpack.c.bf16 %v4938_v62, %v4937_v63  ;;  %4397 = vmatmul.mubr.msk.f32.vlgmr.msra.gmra.mrb[18].mxu0 %vm368_vm3, %v1600_v0 }
 0xa13   :  { %v1782_v56 = vpop.permute.xlu1 %1781 }
 0xa14   :  { %4704 = vmatprep.subr.msk.bf16.mxu1 %vm5383_vm2, %v4702_v1 }
 0xa16   :  { %4701 = vmatpush3.bf16.xpose.msk.msra.mxu0 %vm5383_vm2, %v4696_v53 }
 0xa37   :  { %v1596_v2 = vpop.xlane.xlu0 %1595 }
 0xa38   :  { %5069 = vrcp.f32 %v1596_v2 }
 0xa3b   :  { %v1780_v3 = vpop.permute.xlu0 %1779 }
 0xa3c   :  { %4410 = vmatprep.mubr.msk.f32.mxu0 %vm195_vm1, %v1780_v3 }
 0xa3d   :  { %4411 = vmatmul.mubr.msk.f32.vlgmr.msra.gmra.mrb[20].mxu0 %vm195_vm1, %v1782_v56 }
 0xa3f   :  { %v1871_v9 = vpop.permute.xlu0 %1870 }
 0xa42   :  { %v5070_v5 = vpop.eup %5069 }
 0xa43   :  { %v1604_v8 = vmul.f32 %v5070_v5, %v5062_v21 }
 0xa44   :  { %v1593_v4 = vpop.xlane.xlu1 %1592 }
 0xa45   :  { %5071 = vrcp.f32 %v1593_v4 }
 0xa48   :  { %v1873_v12 = vpop.permute.xlu1 %1872 }
 0xa4f   :  { %v5072_v6 = vpop.eup %5071 }
 0xa50   :  { %v1602_v7 = vmul.f32 %v5072_v6, %v5064_v23 }
 0xa52   :  { %4403 = vmatprep.mubr.msk.f32.mxu1 %vm368_vm3, %v1602_v7 }
 0xa53   :  { %4404 = vmatmul.mubr.msk.f32.vlgmr.msra.gmra.mrb[18].mxu1 %vm368_vm3, %v1604_v8 }
 0xa54   :  { %4707 = vmatpush3.bf16.xpose.msk.msra.mxu1 %vm5383_vm2, %v4702_v1  ;;  %4417 = vmatprep.mubr.msk.f32.mxu1 %vm195_vm1, %v1871_v9 }
 0xa5b   :  { %4418 = vmatmul.mubr.msk.f32.vlgmr.msra.gmra.mrb[20].mxu1 %vm195_vm1, %v1873_v12 }
 0xae5   :  { %v5583_v13 = vpop.f32.mrb[18].mxu0 }
 0xae6   :  { %v5585_v14 = vpop.f32.mrb[19].mxu0 }
 0xb10   :  { %v4412_v15 = vpop.f32.mrb[20].mxu0 }
 0xb11   :  { %v1861_v18 = vpop.f32.mrb[21].mxu0  ;;  %v1964_v21 = vsel %vm368_vm3, %v4412_v15, -inf }
 0xb12   :  { %1965 = vmax.xlane.f32.xlu1 %v1964_v21  ;;  %v1961_v22 = vsel %vm368_vm3, %v1861_v18, -inf }
 0xb13   :  { %1962 = vmax.xlane.f32.xlu0 %v1961_v22 }
 0xb26   :  { %v5589_v23 = vpop.f32.mrb[18].mxu1 }
 0xb27   :  { %v5591_v24 = vpop.f32.mrb[19].mxu1 }
 0xb2e   :  { %v4419_v27 = vpop.f32.mrb[20].mxu1 }
 0xb2f   :  { %v1952_v28 = vpop.f32.mrb[21].mxu1  ;;  %v1970_v32 = vsel %vm368_vm3, %v4419_v27, -inf }
 0xb30   :  { %v1967_v29 = vsel %vm368_vm3, %v1952_v28, -inf }
 0xb31   :  { %1968 = vmax.xlane.f32.xlu0 %v1967_v29 }
 0xb35   :  { %1971 = vmax.xlane.f32.xlu0 %v1970_v32 }
 0xb9f   :  { %v1966_v33 = vpop.xlane.xlu1 %1965 }
 0xba0   :  { %v1974_v35 = vsub.f32 %v4412_v15, %v1966_v33  ;;  %v1963_v37 = vpop.xlane.xlu0 %1962 }
 0xba1   :  { %v1973_v38 = vsub.f32 %v1861_v18, %v1963_v37 }
 0xba2   :  { %v1979_v39 = vmul.f32 1.442695, %v1974_v35 }
 0xba3   :  { %v1977_v41 = vmul.f32 1.442695, %v1973_v38 }
 0xba4   :  { %5073 = vpow2.f32 %v1979_v39 }
 0xba5   :  { %5075 = vpow2.f32 %v1977_v41 }
 0xbae   :  { %v5074_v42 = vpop.eup %5073 }
 0xbaf   :  { %v5076_v43 = vpop.eup %5075  ;;  %v1988_v48 = vsel %vm368_vm3, %v5074_v42, 0.0 }
 0xbb0   :  { %1989 = vadd.xlane.f32.xlu0 %v1988_v48  ;;  %v1985_v50 = vsel %vm368_vm3, %v5076_v43, 0.0 }
 0xbb1   :  { %1986 = vadd.xlane.f32.xlu1 %v1985_v50 }
 0xbbe   :  { %v1969_v51 = vpop.xlane.xlu0 %1968 }
 0xbbf   :  { %v1975_v62 = vsub.f32 %v1952_v28, %v1969_v51 }
 0xbc1   :  { %v1981_v63 = vmul.f32 1.442695, %v1975_v62 }
 0xbc2   :  { %4940 = vrot.lane.b32.xlu1 %v5363_v47, %s5218_s19  ;;  %v1972_v53 = vpop.xlane.xlu0 %1971 }
 0xbc3   :  { %v1976_v59 = vsub.f32 %v4419_v27, %v1972_v53 }
 0xbc5   :  { %v1983_v60 = vmul.f32 1.442695, %v1976_v59 }
 0xbc6   :  { %4950 = vrot.lane.b32.xlu1 %v5361_v44, %s5219_s20  ;;  %4945 = vrot.lane.b32.xlu0 %v5377_v57, %s5218_s19 }
 0xbc7   :  { %5077 = vpow2.f32 %v1983_v60 }
 0xbc8   :  { %5079 = vpow2.f32 %v1981_v63 }
 0xbca   :  { %4955 = vrot.lane.b32.xlu1 %v5373_v55, %s5219_s20 }
 0xbce   :  { %2181 = vrot.lane.b32.xlu1 %v5357_v40, %s5220_s21 }
 0xbd1   :  { %v5078_v0 = vpop.eup %5077 }
 0xbd2   :  { %v1994_v1 = vsel %vm368_vm3, %v5078_v0, 0.0  ;;  %v5080_v2 = vpop.eup %5079 }
 0xbd3   :  { %v1991_v3 = vsel %vm368_vm3, %v5080_v2, 0.0 }
 0xbe5   :  { %1995 = vadd.xlane.f32.xlu0 %v1994_v1 }
 0xbf2   :  { %1992 = vadd.xlane.f32.xlu1 %v1991_v3 }
 0xbfb   :  { %2179 = vrot.lane.b32.xlu0 %v5351_v36, %s5220_s21 }
 0xbff   :  { %2270 = vrot.lane.b32.xlu0 %v5367_v49, %s5220_s21 }
 0xc03   :  { %2272 = vrot.lane.b32.xlu1 %v5369_v52, %s5220_s21 }
 0xc3d   :  { %v1990_v56 = vpop.xlane.xlu0 %1989 }
 0xc3e   :  { %5081 = vrcp.f32 %v1990_v56  ;;  %v1987_v4 = vpop.xlane.xlu1 %1986 }
 0xc3f   :  { %5083 = vrcp.f32 %v1987_v4 }
 0xc41   :  { %v4946_v5 = vpop.permute.xlu0 %4945 }
 0xc42   :  { %v4948_v6 = vunpack.i.h.bf16 %v4946_v5  ;;  %v4947_v7 = vunpack.i.l.bf16 %v4946_v5  ;;  %v4941_v8 = vpop.permute.xlu1 %4940 }
 0xc43   :  { %v4943_v9 = vunpack.i.h.bf16 %v4941_v8  ;;  %v4942_v12 = vunpack.i.l.bf16 %v4941_v8 }
 0xc44   :  { %v4712_v15 = vpack.c.bf16 %v4948_v6, %v4947_v7 }
 0xc45   :  { %v4708_v18 = vpack.c.bf16 %v4943_v9, %v4942_v12 }
 0xc46   :  { %v4951_v21 = vpop.permute.xlu1 %4950  ;;  %4713 = vmatprep.subr.bf16.mxu1 %v4712_v15 }
 0xc47   :  { %v4953_v22 = vunpack.i.h.bf16 %v4951_v21  ;;  %v4952_v27 = vunpack.i.l.bf16 %v4951_v21  ;;  %4709 = vmatprep.subr.bf16.mxu0 %v4708_v18  ;;  %4715 = vmatpush3.bf16.msra.mxu1 %v4712_v15 }
 0xc48   :  { %v5082_v28 = vpop.eup %5081  ;;  %4711 = vmatpush3.bf16.msra.mxu0 %v4708_v18 }
 0xc49   :  { %v5084_v29 = vpop.eup %5083  ;;  %v4716_v32 = vpack.c.bf16 %v4953_v22, %v4952_v27  ;;  %v2000_v39 = vmul.f32 %v5082_v28, %v5074_v42 }
 0xc4a   :  { %v4956_v33 = vpop.permute.xlu1 %4955  ;;  %v1998_v35 = vmul.f32 %v5084_v29, %v5076_v43 }
 0xc4b   :  { %v4958_v37 = vunpack.i.h.bf16 %v4956_v33  ;;  %v4957_v38 = vunpack.i.l.bf16 %v4956_v33  ;;  %4718 = vmatprep.subr.msk.bf16.mxu0 %vm5383_vm2, %v4716_v32 }
 0xc4c   :  { %4424 = vmatprep.mubr.msk.f32.mxu0 %vm368_vm3, %v1998_v35 }
 0xc4d   :  { %v4722_v41 = vpack.c.bf16 %v4958_v37, %v4957_v38  ;;  %4425 = vmatmul.mubr.msk.f32.vlgmr.msra.gmra.mrb[22].mxu0 %vm368_vm3, %v2000_v39 }
 0xc4e   :  { %v2182_v43 = vpop.permute.xlu1 %2181 }
 0xc4f   :  { %4724 = vmatprep.subr.msk.bf16.mxu1 %vm5383_vm2, %v4722_v41 }
 0xc51   :  { %4721 = vmatpush3.bf16.xpose.msk.msra.mxu0 %vm5383_vm2, %v4716_v32 }
 0xc72   :  { %v1996_v48 = vpop.xlane.xlu0 %1995 }
 0xc73   :  { %5085 = vrcp.f32 %v1996_v48 }
 0xc76   :  { %v2180_v50 = vpop.permute.xlu0 %2179 }
 0xc77   :  { %4438 = vmatprep.mubr.msk.f32.mxu0 %vm195_vm1, %v2180_v50 }
 0xc78   :  { %4439 = vmatmul.mubr.msk.f32.vlgmr.msra.gmra.mrb[24].mxu0 %vm195_vm1, %v2182_v43 }
 0xc7a   :  { %v2271_v62 = vpop.permute.xlu0 %2270 }
 0xc7d   :  { %v5086_v51 = vpop.eup %5085 }
 0xc7e   :  { %v2004_v60 = vmul.f32 %v5086_v51, %v5078_v0 }
 0xc7f   :  { %v1993_v42 = vpop.xlane.xlu1 %1992 }
 0xc80   :  { %5087 = vrcp.f32 %v1993_v42 }
 0xc83   :  { %v2273_v63 = vpop.permute.xlu1 %2272 }
 0xc8a   :  { %v5088_v53 = vpop.eup %5087 }
 0xc8b   :  { %v2002_v59 = vmul.f32 %v5088_v53, %v5080_v2 }
 0xc8d   :  { %4431 = vmatprep.mubr.msk.f32.mxu1 %vm368_vm3, %v2002_v59 }
 0xc8e   :  { %4432 = vmatmul.mubr.msk.f32.vlgmr.msra.gmra.mrb[22].mxu1 %vm368_vm3, %v2004_v60 }
 0xc8f   :  { %4727 = vmatpush3.bf16.xpose.msk.msra.mxu1 %vm5383_vm2, %v4722_v41  ;;  %4445 = vmatprep.mubr.msk.f32.mxu1 %vm195_vm1, %v2271_v62 }
 0xc96   :  { %4446 = vmatmul.mubr.msk.f32.vlgmr.msra.gmra.mrb[24].mxu1 %vm195_vm1, %v2273_v63 }
 0xd20   :  { %v5631_v1 = vpop.f32.mrb[22].mxu0 }
 0xd21   :  { %v5633_v3 = vpop.f32.mrb[23].mxu0 }
 0xd4b   :  { %v4440_v56 = vpop.f32.mrb[24].mxu0 }
 0xd4c   :  { %v2261_v2 = vpop.f32.mrb[25].mxu0  ;;  %v2364_v0 = vsel %vm368_vm3, %v4440_v56, -inf }
 0xd4d   :  { %2365 = vmax.xlane.f32.xlu1 %v2364_v0  ;;  %v2361_v4 = vsel %vm368_vm3, %v2261_v2, -inf }
 0xd4e   :  { %2362 = vmax.xlane.f32.xlu0 %v2361_v4 }
 0xd61   :  { %v5637_v5 = vpop.f32.mrb[22].mxu1 }
 0xd62   :  { %v5639_v6 = vpop.f32.mrb[23].mxu1 }
 0xd69   :  { %v4447_v7 = vpop.f32.mrb[24].mxu1 }
 0xd6a   :  { %v2352_v8 = vpop.f32.mrb[25].mxu1  ;;  %v2370_v12 = vsel %vm368_vm3, %v4447_v7, -inf }
 0xd6b   :  { %v2367_v9 = vsel %vm368_vm3, %v2352_v8, -inf }
 0xd6c   :  { %2368 = vmax.xlane.f32.xlu0 %v2367_v9 }
 0xd70   :  { %2371 = vmax.xlane.f32.xlu0 %v2370_v12 }
 0xdda   :  { %v2366_v15 = vpop.xlane.xlu1 %2365 }
 0xddb   :  { %v2374_v18 = vsub.f32 %v4440_v56, %v2366_v15  ;;  %v2363_v21 = vpop.xlane.xlu0 %2362 }
 0xddc   :  { %v2373_v22 = vsub.f32 %v2261_v2, %v2363_v21 }
 0xddd   :  { %v2379_v27 = vmul.f32 1.442695, %v2374_v18 }
 0xdde   :  { %v2377_v28 = vmul.f32 1.442695, %v2373_v22 }
 0xddf   :  { %5089 = vpow2.f32 %v2379_v27 }
 0xde0   :  { %5091 = vpow2.f32 %v2377_v28 }
 0xde9   :  { %v5090_v29 = vpop.eup %5089 }
 0xdea   :  { %v5092_v32 = vpop.eup %5091  ;;  %v2388_v33 = vsel %vm368_vm3, %v5090_v29, 0.0 }
 0xdeb   :  { %2389 = vadd.xlane.f32.xlu0 %v2388_v33  ;;  %v2385_v35 = vsel %vm368_vm3, %v5092_v32, 0.0 }
 0xdec   :  { %2386 = vadd.xlane.f32.xlu1 %v2385_v35 }
 0xdf9   :  { %v2369_v37 = vpop.xlane.xlu0 %2368 }
 0xdfa   :  { %v2375_v48 = vsub.f32 %v2352_v8, %v2369_v37 }
 0xdfc   :  { %v2381_v50 = vmul.f32 1.442695, %v2375_v48 }
 0xdfd   :  { %4960 = vrot.lane.b32.xlu1 %v5363_v47, %s5220_s21  ;;  %v2372_v38 = vpop.xlane.xlu0 %2371 }
 0xdfe   :  { %v2376_v39 = vsub.f32 %v4447_v7, %v2372_v38 }
 0xe00   :  { %v2383_v41 = vmul.f32 1.442695, %v2376_v39 }
 0xe01   :  { %4970 = vrot.lane.b32.xlu1 %v5361_v44, %s5221_s22  ;;  %4965 = vrot.lane.b32.xlu0 %v5377_v57, %s5220_s21 }
 0xe02   :  { %5093 = vpow2.f32 %v2383_v41 }
 0xe03   :  { %5095 = vpow2.f32 %v2381_v50 }
 0xe05   :  { %4975 = vrot.lane.b32.xlu1 %v5373_v55, %s5221_s22 }
 0xe09   :  { %2581 = vrot.lane.b32.xlu1 %v5357_v40, %s5222_s23 }
 0xe0c   :  { %v5094_v43 = vpop.eup %5093 }
 0xe0d   :  { %v2394_v42 = vsel %vm368_vm3, %v5094_v43, 0.0  ;;  %v5096_v51 = vpop.eup %5095 }
 0xe0e   :  { %v2391_v53 = vsel %vm368_vm3, %v5096_v51, 0.0 }
 0xe20   :  { %2395 = vadd.xlane.f32.xlu0 %v2394_v42 }
 0xe2d   :  { %2392 = vadd.xlane.f32.xlu1 %v2391_v53 }
 0xe36   :  { %2579 = vrot.lane.b32.xlu0 %v5351_v36, %s5222_s23 }
 0xe3a   :  { %2670 = vrot.lane.b32.xlu0 %v5367_v49, %s5222_s23 }
 0xe3e   :  { %2672 = vrot.lane.b32.xlu1 %v5369_v52, %s5222_s23 }
 0xe78   :  { %v2390_v59 = vpop.xlane.xlu0 %2389 }
 0xe79   :  { %5097 = vrcp.f32 %v2390_v59  ;;  %v2387_v60 = vpop.xlane.xlu1 %2386 }
 0xe7a   :  { %5099 = vrcp.f32 %v2387_v60 }
 0xe7c   :  { %v4966_v62 = vpop.permute.xlu0 %4965 }
 0xe7d   :  { %v4968_v63 = vunpack.i.h.bf16 %v4966_v62  ;;  %v4967_v56 = vunpack.i.l.bf16 %v4966_v62  ;;  %v4961_v2 = vpop.permute.xlu1 %4960 }
 0xe7e   :  { %v4963_v0 = vunpack.i.h.bf16 %v4961_v2  ;;  %v4962_v4 = vunpack.i.l.bf16 %v4961_v2 }
 0xe7f   :  { %v4732_v7 = vpack.c.bf16 %v4968_v63, %v4967_v56 }
 0xe80   :  { %v4728_v8 = vpack.c.bf16 %v4963_v0, %v4962_v4 }
 0xe81   :  { %v4971_v9 = vpop.permute.xlu1 %4970  ;;  %4733 = vmatprep.subr.bf16.mxu1 %v4732_v7 }
 0xe82   :  { %v4973_v12 = vunpack.i.h.bf16 %v4971_v9  ;;  %v4972_v15 = vunpack.i.l.bf16 %v4971_v9  ;;  %4729 = vmatprep.subr.bf16.mxu0 %v4728_v8  ;;  %4735 = vmatpush3.bf16.msra.mxu1 %v4732_v7 }
 0xe83   :  { %v5098_v18 = vpop.eup %5097  ;;  %4731 = vmatpush3.bf16.msra.mxu0 %v4728_v8 }
 0xe84   :  { %v5100_v21 = vpop.eup %5099  ;;  %v4736_v22 = vpack.c.bf16 %v4973_v12, %v4972_v15  ;;  %v2400_v33 = vmul.f32 %v5098_v18, %v5090_v29 }
 0xe85   :  { %v4976_v27 = vpop.permute.xlu1 %4975  ;;  %v2398_v28 = vmul.f32 %v5100_v21, %v5092_v32 }
 0xe86   :  { %v4978_v35 = vunpack.i.h.bf16 %v4976_v27  ;;  %v4977_v37 = vunpack.i.l.bf16 %v4976_v27  ;;  %4738 = vmatprep.subr.msk.bf16.mxu0 %vm5383_vm2, %v4736_v22 }
 0xe87   :  { %4452 = vmatprep.mubr.msk.f32.mxu0 %vm368_vm3, %v2398_v28 }
 0xe88   :  { %v4742_v38 = vpack.c.bf16 %v4978_v35, %v4977_v37  ;;  %4453 = vmatmul.mubr.msk.f32.vlgmr.msra.gmra.mrb[26].mxu0 %vm368_vm3, %v2400_v33 }
 0xe89   :  { %v2582_v32 = vpop.permute.xlu1 %2581 }
 0xe8a   :  { %4744 = vmatprep.subr.msk.bf16.mxu1 %vm5383_vm2, %v4742_v38 }
 0xe8c   :  { %4741 = vmatpush3.bf16.xpose.msk.msra.mxu0 %vm5383_vm2, %v4736_v22 }
 0xead   :  { %v2396_v39 = vpop.xlane.xlu0 %2395 }
 0xeae   :  { %5101 = vrcp.f32 %v2396_v39 }
 0xeb1   :  { %v2580_v41 = vpop.permute.xlu0 %2579 }
 0xeb2   :  { %4466 = vmatprep.mubr.msk.f32.mxu0 %vm195_vm1, %v2580_v41 }
 0xeb3   :  { %4467 = vmatmul.mubr.msk.f32.vlgmr.msra.gmra.mrb[28].mxu0 %vm195_vm1, %v2582_v32 }
 0xeb5   :  { %v2671_v59 = vpop.permute.xlu0 %2670 }
 0xeb8   :  { %v5102_v48 = vpop.eup %5101 }
 0xeb9   :  { %v2404_v53 = vmul.f32 %v5102_v48, %v5094_v43 }
 0xeba   :  { %v2393_v29 = vpop.xlane.xlu1 %2392 }
 0xebb   :  { %5103 = vrcp.f32 %v2393_v29 }
 0xebe   :  { %v2673_v60 = vpop.permute.xlu1 %2672 }
 0xec5   :  { %v5104_v50 = vpop.eup %5103 }
 0xec6   :  { %v2402_v42 = vmul.f32 %v5104_v50, %v5096_v51 }
 0xec8   :  { %4459 = vmatprep.mubr.msk.f32.mxu1 %vm368_vm3, %v2402_v42 }
 0xec9   :  { %4460 = vmatmul.mubr.msk.f32.vlgmr.msra.gmra.mrb[26].mxu1 %vm368_vm3, %v2404_v53 }
 0xeca   :  { %4747 = vmatpush3.bf16.xpose.msk.msra.mxu1 %vm5383_vm2, %v4742_v38  ;;  %4473 = vmatprep.mubr.msk.f32.mxu1 %vm195_vm1, %v2671_v59 }
 0xed1   :  { %4474 = vmatmul.mubr.msk.f32.vlgmr.msra.gmra.mrb[28].mxu1 %vm195_vm1, %v2673_v60 }
 0xf5b   :  { %v5679_v62 = vpop.f32.mrb[26].mxu0 }
 0xf5c   :  { %v5681_v63 = vpop.f32.mrb[27].mxu0 }
 0xf86   :  { %v4468_v56 = vpop.f32.mrb[28].mxu0 }
 0xf87   :  { %v2661_v51 = vpop.f32.mrb[29].mxu0  ;;  %v2764_v43 = vsel %vm368_vm3, %v4468_v56, -inf }
 0xf88   :  { %2765 = vmax.xlane.f32.xlu1 %v2764_v43  ;;  %v2761_v2 = vsel %vm368_vm3, %v2661_v51, -inf }
 0xf89   :  { %2762 = vmax.xlane.f32.xlu0 %v2761_v2 }
 0xf9c   :  { %v5685_v0 = vpop.f32.mrb[26].mxu1 }
 0xf9d   :  { %v5687_v4 = vpop.f32.mrb[27].mxu1 }
 0xfa4   :  { %v4475_v7 = vpop.f32.mrb[28].mxu1 }
 0xfa5   :  { %v2752_v8 = vpop.f32.mrb[29].mxu1  ;;  %v2770_v12 = vsel %vm368_vm3, %v4475_v7, -inf }
 0xfa6   :  { %v2767_v9 = vsel %vm368_vm3, %v2752_v8, -inf }
 0xfa7   :  { %2768 = vmax.xlane.f32.xlu0 %v2767_v9 }
 0xfab   :  { %2771 = vmax.xlane.f32.xlu0 %v2770_v12 }
0x1015   :  { %v2766_v15 = vpop.xlane.xlu1 %2765 }
0x1016   :  { %v2774_v18 = vsub.f32 %v4468_v56, %v2766_v15  ;;  %v2763_v21 = vpop.xlane.xlu0 %2762 }
0x1017   :  { %v2773_v22 = vsub.f32 %v2661_v51, %v2763_v21 }
0x1018   :  { %v2779_v27 = vmul.f32 1.442695, %v2774_v18 }
0x1019   :  { %v2777_v28 = vmul.f32 1.442695, %v2773_v22 }
0x101a   :  { %5105 = vpow2.f32 %v2779_v27 }
0x101b   :  { %5107 = vpow2.f32 %v2777_v28 }
0x1024   :  { %v5106_v33 = vpop.eup %5105 }
0x1025   :  { %v5108_v35 = vpop.eup %5107  ;;  %v2788_v37 = vsel %vm368_vm3, %v5106_v33, 0.0 }
0x1026   :  { %2789 = vadd.xlane.f32.xlu0 %v2788_v37  ;;  %v2785_v38 = vsel %vm368_vm3, %v5108_v35, 0.0 }
0x1027   :  { %2786 = vadd.xlane.f32.xlu1 %v2785_v38 }
0x1034   :  { %v2769_v39 = vpop.xlane.xlu0 %2768 }
0x1035   :  { %v2775_v48 = vsub.f32 %v2752_v8, %v2769_v39 }
0x1037   :  { %v2781_v50 = vmul.f32 1.442695, %v2775_v48 }
0x1038   :  { %4980 = vrot.lane.b32.xlu1 %v5363_v47, %s5222_s23  ;;  %v2772_v41 = vpop.xlane.xlu0 %2771 }
0x1039   :  { %v2776_v32 = vsub.f32 %v4475_v7, %v2772_v41 }
0x103b   :  { %v2783_v29 = vmul.f32 1.442695, %v2776_v32 }
0x103c   :  { %4990 = vrot.lane.b32.xlu1 %v5361_v44, %s5207_s12  ;;  %4985 = vrot.lane.b32.xlu0 %v5377_v57, %s5222_s23 }
0x103d   :  { %5109 = vpow2.f32 %v2783_v29 }
0x103e   :  { %5111 = vpow2.f32 %v2781_v50 }
0x1040   :  { %4995 = vrot.lane.b32.xlu1 %v5373_v55, %s5207_s12 }
0x1044   :  { %2981 = vrot.lane.b32.xlu1 %v5357_v40, %s5223_s24 }
0x1047   :  { %v5110_v42 = vpop.eup %5109 }
0x1048   :  { %v2794_v44 = vsel %vm368_vm3, %v5110_v42, 0.0  ;;  %v5112_v53 = vpop.eup %5111 }
0x1049   :  { %v2791_v59 = vsel %vm368_vm3, %v5112_v53, 0.0 }
0x105b   :  { %2795 = vadd.xlane.f32.xlu0 %v2794_v44 }
0x1068   :  { %2792 = vadd.xlane.f32.xlu1 %v2791_v59 }
0x1071   :  { %2979 = vrot.lane.b32.xlu0 %v5351_v36, %s5223_s24 }
0x1075   :  { %3070 = vrot.lane.b32.xlu0 %v5367_v49, %s5223_s24 }
0x1079   :  { %3072 = vrot.lane.b32.xlu1 %v5369_v52, %s5223_s24 }
0x10b3   :  { %v2790_v40 = vpop.xlane.xlu0 %2789 }
0x10b4   :  { %5113 = vrcp.f32 %v2790_v40  ;;  %v2787_v55 = vpop.xlane.xlu1 %2786 }
0x10b5   :  { %5115 = vrcp.f32 %v2787_v55 }
0x10b7   :  { %v4986_v60 = vpop.permute.xlu0 %4985 }
0x10b8   :  { %v4988_v56 = vunpack.i.h.bf16 %v4986_v60  ;;  %v4987_v51 = vunpack.i.l.bf16 %v4986_v60  ;;  %v4981_v43 = vpop.permute.xlu1 %4980 }
0x10b9   :  { %v4983_v2 = vunpack.i.h.bf16 %v4981_v43  ;;  %v4982_v7 = vunpack.i.l.bf16 %v4981_v43 }
0x10ba   :  { %v4752_v8 = vpack.c.bf16 %v4988_v56, %v4987_v51 }
0x10bb   :  { %v4748_v9 = vpack.c.bf16 %v4983_v2, %v4982_v7 }
0x10bc   :  { %v4991_v12 = vpop.permute.xlu1 %4990  ;;  %4753 = vmatprep.subr.bf16.mxu1 %v4752_v8 }
0x10bd   :  { %v4993_v36 = vunpack.i.h.bf16 %v4991_v12  ;;  %v4992_v15 = vunpack.i.l.bf16 %v4991_v12  ;;  %4749 = vmatprep.subr.bf16.mxu0 %v4748_v9  ;;  %4755 = vmatpush3.bf16.msra.mxu1 %v4752_v8 }
0x10be   :  { %v5114_v49 = vpop.eup %5113  ;;  %4751 = vmatpush3.bf16.msra.mxu0 %v4748_v9 }
0x10bf   :  { %v5116_v52 = vpop.eup %5115  ;;  %v4756_v18 = vpack.c.bf16 %v4993_v36, %v4992_v15  ;;  %v2800_v27 = vmul.f32 %v5114_v49, %v5106_v33 }
0x10c0   :  { %v4996_v21 = vpop.permute.xlu1 %4995  ;;  %v2798_v22 = vmul.f32 %v5116_v52, %v5108_v35 }
0x10c1   :  { %v4998_v28 = vunpack.i.h.bf16 %v4996_v21  ;;  %v4997_v37 = vunpack.i.l.bf16 %v4996_v21  ;;  %4758 = vmatprep.subr.msk.bf16.mxu0 %vm5383_vm2, %v4756_v18 }
0x10c2   :  { %4480 = vmatprep.mubr.msk.f32.mxu0 %vm368_vm3, %v2798_v22 }
0x10c3   :  { %v4762_v38 = vpack.c.bf16 %v4998_v28, %v4997_v37  ;;  %4481 = vmatmul.mubr.msk.f32.vlgmr.msra.gmra.mrb[30].mxu0 %vm368_vm3, %v2800_v27 }
0x10c4   :  { %v2982_v35 = vpop.permute.xlu1 %2981 }
0x10c5   :  { %4764 = vmatprep.subr.msk.bf16.mxu1 %vm5383_vm2, %v4762_v38 }
0x10c7   :  { %4761 = vmatpush3.bf16.xpose.msk.msra.mxu0 %vm5383_vm2, %v4756_v18 }
0x10e8   :  { %v2796_v39 = vpop.xlane.xlu0 %2795 }
0x10e9   :  { %5117 = vrcp.f32 %v2796_v39 }
0x10ec   :  { %v2980_v41 = vpop.permute.xlu0 %2979 }
0x10ed   :  { %4494 = vmatprep.mubr.msk.f32.mxu0 %vm195_vm1, %v2980_v41 }
0x10ee   :  { %4495 = vmatmul.mubr.msk.f32.vlgmr.msra.gmra.mrb[32].mxu0 %vm195_vm1, %v2982_v35 }
0x10f0   :  { %v3071_v44 = vpop.permute.xlu0 %3070 }
0x10f3   :  { %v5118_v32 = vpop.eup %5117 }
0x10f4   :  { %v2804_v50 = vmul.f32 %v5118_v32, %v5110_v42 }
0x10f5   :  { %v2793_v33 = vpop.xlane.xlu1 %2792 }
0x10f6   :  { %5119 = vrcp.f32 %v2793_v33 }
0x10f9   :  { %v3073_v59 = vpop.permute.xlu1 %3072 }
0x1100   :  { %v5120_v29 = vpop.eup %5119 }
0x1101   :  { %v2802_v48 = vmul.f32 %v5120_v29, %v5112_v53 }
0x1103   :  { %4487 = vmatprep.mubr.msk.f32.mxu1 %vm368_vm3, %v2802_v48 }
0x1104   :  { %4488 = vmatmul.mubr.msk.f32.vlgmr.msra.gmra.mrb[30].mxu1 %vm368_vm3, %v2804_v50 }
0x1105   :  { %4767 = vmatpush3.bf16.xpose.msk.msra.mxu1 %vm5383_vm2, %v4762_v38  ;;  %4501 = vmatprep.mubr.msk.f32.mxu1 %vm195_vm1, %v3071_v44 }
0x110c   :  { %4502 = vmatmul.mubr.msk.f32.vlgmr.msra.gmra.mrb[32].mxu1 %vm195_vm1, %v3073_v59  ;;  %v3524_v59 = vld [vmem:[%s5979_s3] sm:$0xff] }
0x1196   :  { %v4482_v40 = vpop.f32.mrb[30].mxu0 }
0x1197   :  { %v2883_v55 = vpop.f32.mrb[31].mxu0 }
0x11c1   :  { %v4496_v60 = vpop.f32.mrb[32].mxu0 }
0x11c2   :  { %v3061_v56 = vpop.f32.mrb[33].mxu0  ;;  %v3164_v53 = vsel %vm368_vm3, %v4496_v60, -inf }
0x11c3   :  { %3165 = vmax.xlane.f32.xlu1 %v3164_v53  ;;  %v3161_v42 = vsel %vm368_vm3, %v3061_v56, -inf }
0x11c4   :  { %3162 = vmax.xlane.f32.xlu0 %v3161_v42  ;;  %v3528_v42 = vld [vmem:[%s5979_s3 + $0x20] sm:$0xff] }
0x11d7   :  { %v5729_v51 = vpop.f32.mrb[30].mxu1 }
0x11d8   :  { %v5731_v43 = vpop.f32.mrb[31].mxu1 }
0x11df   :  { %v4503_v61 = vpop.f32.mrb[32].mxu1 }
0x11e0   :  { %v3152_v2 = vpop.f32.mrb[33].mxu1  ;;  %v3170_v8 = vsel %vm368_vm3, %v4503_v61, -inf }
0x11e1   :  { %v3167_v7 = vsel %vm368_vm3, %v3152_v2, -inf }
0x11e2   :  { %3168 = vmax.xlane.f32.xlu0 %v3167_v7  ;;  %v3530_v7 = vld [vmem:[%s5979_s3 + $0x30] sm:$0xff] }
0x11e6   :  { %3171 = vmax.xlane.f32.xlu0 %v3170_v8  ;;  %v3531_v8 = vld [vmem:[%s5979_s3 + $0x38] sm:$0xff] }
0x1250   :  { %v3166_v9 = vpop.xlane.xlu1 %3165 }
0x1251   :  { %v3174_v12 = vsub.f32 %v4496_v60, %v3166_v9  ;;  %v3163_v36 = vpop.xlane.xlu0 %3162  ;;  %v4788_v9 = vpack.c.bf16 %v3531_v8, %v3530_v7 }
0x1252   :  { %v3173_v15 = vsub.f32 %v3061_v56, %v3163_v36  ;;  %v3527_v56 = vld [vmem:[%s5979_s3 + $0x18] sm:$0xff] }
0x1253   :  { %v3179_v49 = vmul.f32 1.442695, %v3174_v12 }
0x1254   :  { %v3177_v52 = vmul.f32 1.442695, %v3173_v15 }
0x1255   :  { %5121 = vpow2.f32 %v3179_v49 }
0x1256   :  { %5123 = vpow2.f32 %v3177_v52 }
0x125f   :  { %v5122_v18 = vpop.eup %5121 }
0x1260   :  { %v5124_v21 = vpop.eup %5123  ;;  %v3188_v22 = vsel %vm368_vm3, %v5122_v18, 0.0 }
0x1261   :  { %3189 = vadd.xlane.f32.xlu0 %v3188_v22  ;;  %v3185_v27 = vsel %vm368_vm3, %v5124_v21, 0.0 }
0x1262   :  { %3186 = vadd.xlane.f32.xlu1 %v3185_v27 }
0x126f   :  { %v3169_v28 = vpop.xlane.xlu0 %3168 }
0x1270   :  { %v3175_v37 = vsub.f32 %v3152_v2, %v3169_v28 }
0x1272   :  { %v3181_v38 = vmul.f32 1.442695, %v3175_v37 }
0x1273   :  { %v3172_v39 = vpop.xlane.xlu0 %3171 }
0x1274   :  { %5125 = vpow2.f32 %v3181_v38  ;;  %v3176_v41 = vsub.f32 %v4503_v61, %v3172_v39  ;;  %v3529_v61 = vld [vmem:[%s5979_s3 + $0x28] sm:$0xff] }
0x1275   :  { %v4784_v2 = vpack.c.bf16 %v3529_v61, %v3528_v42 }
0x1276   :  { %v3183_v35 = vmul.f32 1.442695, %v3176_v41 }
0x1278   :  { %5127 = vpow2.f32 %v3183_v35 }
0x127e   :  { %v5126_v33 = vpop.eup %5125 }
0x127f   :  { %v3191_v32 = vsel %vm368_vm3, %v5126_v33, 0.0 }
0x1280   :  { %3192 = vadd.xlane.f32.xlu1 %v3191_v32 }
0x1282   :  { %v5128_v29 = vpop.eup %5127 }
0x1283   :  { %v3194_v48 = vsel %vm368_vm3, %v5128_v29, 0.0 }
0x1284   :  { %3195 = vadd.xlane.f32.xlu0 %v3194_v48 }
0x1291   :  { %5000 = vrot.lane.b32.xlu1 %v5363_v47, %s5223_s24 }
0x1295   :  { %3383 = vrot.lane.b32.xlu1 %v5489_v20, %s5207_s12 }
0x1299   :  { %3385 = vrot.lane.b32.xlu1 %v5487_v19, %s5207_s12 }
0x129a   :  { %5005 = vrot.lane.b32.xlu0 %v5377_v57, %s5223_s24 }
0x129d   :  { %3401 = vrot.lane.b32.xlu1 %v5535_v45, %s5221_s22 }
0x129e   :  { %3399 = vrot.lane.b32.xlu0 %v5537_v46, %s5221_s22 }
0x12a1   :  { %3417 = vrot.lane.b32.xlu1 %v5583_v13, %s5219_s20 }
0x12a2   :  { %3415 = vrot.lane.b32.xlu0 %v5585_v14, %s5219_s20 }
0x12a5   :  { %3387 = vrot.lane.b32.xlu1 %v5495_v26, %s5207_s12 }
0x12a6   :  { %3431 = vrot.lane.b32.xlu0 %v5633_v3, %s5217_s18 }
0x12a9   :  { %3447 = vrot.lane.b32.xlu1 %v5681_v63, %s5215_s16 }
0x12aa   :  { %3433 = vrot.lane.b32.xlu0 %v5631_v1, %s5217_s18 }
0x12ad   :  { %3403 = vrot.lane.b32.xlu1 %v5543_v58, %s5221_s22 }
0x12ae   :  { %3389 = vrot.lane.b32.xlu0 %v5493_v25, %s5207_s12 }
0x12b1   :  { %3463 = vrot.lane.b32.xlu1 %v2883_v55, %s5213_s14  ;;  %v3526_v55 = vld [vmem:[%s5979_s3 + $0x10] sm:$0xff] }
0x12b2   :  { %3449 = vrot.lane.b32.xlu0 %v5679_v62, %s5215_s16  ;;  %v4780_v53 = vpack.c.bf16 %v3527_v56, %v3526_v55 }
0x12b5   :  { %3419 = vrot.lane.b32.xlu1 %v5591_v24, %s5219_s20 }
0x12b6   :  { %3405 = vrot.lane.b32.xlu0 %v5541_v54, %s5221_s22 }
0x12ba   :  { %3465 = vrot.lane.b32.xlu0 %v4482_v40, %s5213_s14  ;;  %v3525_v40 = vld [vmem:[%s5979_s3 + $0x8] sm:$0xff] }
0x12bb   :  { %v4776_v60 = vpack.c.bf16 %v3525_v40, %v3524_v59 }
0x12be   :  { %3421 = vrot.lane.b32.xlu0 %v5589_v23, %s5219_s20 }
0x12ee   :  { %v3190_v20 = vpop.xlane.xlu0 %3189 }
0x12ef   :  { %v3187_v47 = vpop.xlane.xlu1 %3186 }
0x12f0   :  { %5129 = vrcp.f32 %v3187_v47 }
0x12f1   :  { %5131 = vrcp.f32 %v3190_v20 }
0x12fa   :  { %v5130_v57 = vpop.eup %5129 }
0x12fb   :  { %v3198_v19 = vmul.f32 %v5130_v57, %v5124_v21  ;;  %v5132_v13 = vpop.eup %5131 }
0x12fc   :  { %v3200_v3 = vmul.f32 %v5132_v13, %v5122_v18 }
0x12fd   :  { %4508 = vmatprep.mubr.msk.f32.mxu0 %vm368_vm3, %v3198_v19 }
0x130d   :  { %v3193_v25 = vpop.xlane.xlu1 %3192 }
0x130e   :  { %5133 = vrcp.f32 %v3193_v25 }
0x1311   :  { %v5001_v26 = vpop.permute.xlu1 %5000  ;;  %v3196_v45 = vpop.xlane.xlu0 %3195 }
0x1312   :  { %v5003_v46 = vunpack.i.h.bf16 %v5001_v26  ;;  %v5002_v58 = vunpack.i.l.bf16 %v5001_v26  ;;  %5135 = vrcp.f32 %v3196_v45 }
0x1314   :  { %v4768_v54 = vpack.c.bf16 %v5003_v46, %v5002_v58 }
0x1315   :  { %v5006_v14 = vpop.permute.xlu0 %5005  ;;  %v3384_v52 = vpop.permute.xlu1 %3383 }
0x1316   :  { %v5008_v24 = vunpack.i.h.bf16 %v5006_v14  ;;  %v5007_v23 = vunpack.i.l.bf16 %v5006_v14  ;;  %4769 = vmatprep.subr.bf16.mxu0 %v4768_v54 }
0x1317   :  { %4771 = vmatpush3.bf16.msra.mxu0 %v4768_v54 }
0x1318   :  { %v5134_v1 = vpop.eup %5133  ;;  %v4772_v62 = vpack.c.bf16 %v5008_v24, %v5007_v23 }
0x1319   :  { %v3202_v63 = vmul.f32 %v5134_v1, %v5126_v33  ;;  %v3386_v18 = vpop.permute.xlu1 %3385 }
0x131a   :  { %4509 = vmatmul.mubr.msk.f32.vlgmr.msra.gmra.mrb[34].mxu0 %vm368_vm3, %v3200_v3  ;;  %4773 = vmatprep.subr.bf16.mxu1 %v4772_v62  ;;  %v3492_v32 = vsel %vm195_vm1, %v5441_v10, %v3386_v18  ;;  %v5154_v18 = vld [vmem:[#allocation2] sm:$0xff] }
0x131b   :  { %4775 = vmatpush3.bf16.msra.mxu1 %v4772_v62  ;;  %4515 = vmatprep.mubr.msk.f32.mxu1 %vm368_vm3, %v3202_v63 }
0x131c   :  { %v5136_v50 = vpop.eup %5135  ;;  %4777 = vmatprep.subr.bf16.mxu1 %v4776_v60 }
0x131d   :  { %v3204_v44 = vmul.f32 %v5136_v50, %v5128_v29  ;;  %v3402_v22 = vpop.permute.xlu1 %3401 }
0x131e   :  { %v3496_v47 = vsel %vm368_vm3, %v3492_v32, %v3402_v22 }
0x131f   :  { %4516 = vmatmul.mubr.msk.f32.vlgmr.msra.gmra.mrb[34].mxu1 %vm368_vm3, %v3204_v44 }
0x1320   :  { %4779 = vmatpush3.bf16.msra.mxu1 %v4776_v60 }
0x1321   :  { %4781 = vmatprep.subr.bf16.mxu1 %v4780_v53  ;;  %v3418_v27 = vpop.permute.xlu1 %3417 }
0x1322   :  { %v3501_v19 = vsel %vm3499_vm4, %v3496_v47, %v3418_v27 }
0x1324   :  { %4783 = vmatpush3.bf16.msra.mxu1 %v4780_v53 }
0x1325   :  { %4785 = vmatprep.subr.bf16.mxu1 %v4784_v2 }
0x1328   :  { %4787 = vmatpush3.bf16.msra.mxu1 %v4784_v2 }
0x1329   :  { %4789 = vmatprep.subr.bf16.mxu1 %v4788_v9 }
0x132c   :  { %4791 = vmatpush3.bf16.msra.mxu1 %v4788_v9 }
0x13ed   :  { %v4510_v12 = vpop.f32.mrb[34].mxu0 }
0x13ee   :  { %3481 = vrot.lane.b32.xlu0 %v4510_v12, %s5211_s11  ;;  %v3283_v36 = vpop.f32.mrb[35].mxu0 }
0x13ef   :  { %3479 = vrot.lane.b32.xlu1 %v3283_v36, %s5211_s11 }
0x13f2   :  { %3451 = vrot.lane.b32.xlu0 %v5687_v4, %s5215_s16  ;;  %v4517_v15 = vpop.f32.mrb[34].mxu1  ;;  %v3400_v4 = vpop.permute.xlu0 %3399 }
0x13f3   :  { %3435 = vrot.lane.b32.xlu1 %v5639_v6, %s5217_s18  ;;  %v3370_v49 = vpop.f32.mrb[35].mxu1 }
0x13f6   :  { %3467 = vrot.lane.b32.xlu0 %v5731_v43, %s5213_s14  ;;  %v3416_v6 = vpop.permute.xlu0 %3415 }
0x13f7   :  { %3437 = vrot.lane.b32.xlu1 %v5637_v5, %s5217_s18  ;;  %v3388_v5 = vpop.permute.xlu1 %3387 }
0x13f8   :  { %v3493_v13 = vsel %vm195_vm1, %v5448_v17, %v3388_v5 }
0x13fa   :  { %3483 = vrot.lane.b32.xlu0 %v3370_v49, %s5211_s11  ;;  %v3432_v21 = vpop.permute.xlu0 %3431 }
0x13fb   :  { %3453 = vrot.lane.b32.xlu1 %v5685_v0, %s5215_s16  ;;  %v3448_v38 = vpop.permute.xlu1 %3447 }
0x13fe   :  { %v3434_v43 = vpop.permute.xlu0 %3433 }
0x13ff   :  { %3469 = vrot.lane.b32.xlu1 %v5729_v51, %s5213_s14  ;;  %v3404_v41 = vpop.permute.xlu1 %3403  ;;  %v3491_v51 = vsel %vm195_vm1, %v5443_v11, %v3384_v52  ;;  %v3506_v11 = vsel %vm3504_vm5, %v3501_v19, %v3434_v43  ;;  %v5153_v52 = vld [vmem:[#allocation2 + $0x8] sm:$0xff] }
0x1400   :  { %v3495_v29 = vsel %vm368_vm3, %v3491_v51, %v3400_v4  ;;  %v3497_v24 = vsel %vm368_vm3, %v3493_v13, %v3404_v41 }
0x1401   :  { %v3500_v57 = vsel %vm3499_vm4, %v3495_v29, %v3416_v6 }
0x1402   :  { %v3390_v28 = vpop.permute.xlu0 %3389  ;;  %v3505_v20 = vsel %vm3504_vm5, %v3500_v57, %v3432_v21 }
0x1403   :  { %3485 = vrot.lane.b32.xlu1 %v4517_v15, %s5211_s11  ;;  %v3464_v35 = vpop.permute.xlu1 %3463  ;;  %v3510_v25 = vsel %vm3509_vm6, %v3505_v20, %v3448_v38  ;;  %v3494_v60 = vsel %vm195_vm1, %v5446_v16, %v3390_v28  ;;  %v5860_v16 = vld [vmem:[%s5982_s6] sm:$0x7f]  ;;  %v5155_v38 = vld [vmem:[#allocation2 + $0x10] sm:$0xff] }
0x1404   :  { %v3515_v45 = vsel %vm3514_vm7, %v3510_v25, %v3464_v35  ;;  %v3535_v12 = vrot.slane %v5860_v16, %v79_v31 }
0x1406   :  { %v3450_v37 = vpop.permute.xlu0 %3449 }
0x1407   :  { %v3420_v48 = vpop.permute.xlu1 %3419  ;;  %v3511_v10 = vsel %vm3509_vm6, %v3506_v11, %v3450_v37 }
0x1408   :  { %v3502_v1 = vsel %vm3499_vm4, %v3497_v24, %v3420_v48  ;;  %v3707_v24 = vld [vmem:[#allocation4 + $0x8] sm:$0xff] }
0x140a   :  { %v3406_v39 = vpop.permute.xlu0 %3405 }
0x140b   :  { %v3498_v56 = vsel %vm368_vm3, %v3494_v60, %v3406_v39  ;;  %v5156_v39 = vld [vmem:[#allocation2 + $0x18] sm:$0xff] }
0x140e   :  { %v3466_v0 = vpop.permute.xlu0 %3465 }
0x140f   :  { %v3516_v58 = vsel %vm3514_vm7, %v3511_v10, %v3466_v0 }
0x1412   :  { %v3422_v33 = vpop.permute.xlu0 %3421 }
0x1413   :  { %v3503_v42 = vsel %vm3499_vm4, %v3498_v56, %v3422_v33  ;;  %v3819_v56 = vld [vmem:[%s5981_s5] sm:$0xff] }
0x1460   :  { %v3482_v26 = vpop.permute.xlu0 %3481 }
0x1461   :  { %v3480_v46 = vpop.permute.xlu1 %3479  ;;  %v3521_v14 = vsel %vm3519_vm8, %v3516_v58, %v3482_v26 }
0x1462   :  { %v3520_v54 = vsel %vm3519_vm8, %v3515_v45, %v3480_v46 }
0x1463   :  { %4534 = vmatprep.mubr.msk.f32.mxu1 %vm87_vm0, %v3520_v54 }
0x1464   :  { %v3452_v23 = vpop.permute.xlu0 %3451  ;;  %4535 = vmatmul.mubr.msk.f32.vlgmr.msra.gmra.mrb[36].mxu1 %vm87_vm0, %v3521_v14  ;;  %v3706_v14 = vld [vmem:[#allocation4] sm:$0xff] }
0x1465   :  { %v3436_v3 = vpop.permute.xlu1 %3435 }
0x1466   :  { %v3507_v62 = vsel %vm3504_vm5, %v3502_v1, %v3436_v3  ;;  %v4792_v1 = vpack.c.bf16 %v3707_v24, %v3706_v14 }
0x1467   :  { %v3512_v50 = vsel %vm3509_vm6, %v3507_v62, %v3452_v23  ;;  %v3708_v62 = vld [vmem:[#allocation4 + $0x10] sm:$0xff] }
0x1468   :  { %v3468_v63 = vpop.permute.xlu0 %3467  ;;  %4793 = vmatprep.subr.bf16.mxu1 %v4792_v1 }
0x1469   :  { %v3438_v44 = vpop.permute.xlu1 %3437  ;;  %v3517_v17 = vsel %vm3514_vm7, %v3512_v50, %v3468_v63  ;;  %4795 = vmatpush3.bf16.msra.mxu1 %v4792_v1  ;;  %v3709_v63 = vld [vmem:[#allocation4 + $0x18] sm:$0xff] }
0x146a   :  { %v3508_v61 = vsel %vm3504_vm5, %v3503_v42, %v3438_v44  ;;  %v4796_v50 = vpack.c.bf16 %v3709_v63, %v3708_v62  ;;  %v3710_v44 = vld [vmem:[#allocation4 + $0x20] sm:$0xff]  ;;  %v3821_v42 = vld [vmem:[%s5981_s5 + $0x10] sm:$0xff] }
0x146c   :  { %v3484_v59 = vpop.permute.xlu0 %3483  ;;  %4797 = vmatprep.subr.bf16.mxu1 %v4796_v50 }
0x146d   :  { %v3522_v40 = vsel %vm3519_vm8, %v3517_v17, %v3484_v59  ;;  %v3454_v55 = vpop.permute.xlu1 %3453  ;;  %4799 = vmatpush3.bf16.msra.mxu1 %v4796_v50  ;;  %v3711_v17 = vld [vmem:[#allocation4 + $0x28] sm:$0xff] }
0x146e   :  { %4537 = vmatprep.mubr.msk.f32.mxu1 %vm87_vm0, %v3522_v40  ;;  %v3513_v2 = vsel %vm3509_vm6, %v3508_v61, %v3454_v55  ;;  %v4800_v59 = vpack.c.bf16 %v3711_v17, %v3710_v44  ;;  %v3712_v40 = vld [vmem:[#allocation4 + $0x30] sm:$0xff]  ;;  %v3713_v55 = vld [vmem:[#allocation4 + $0x38] sm:$0xff] }
0x146f   :  { %v4804_v60 = vpack.c.bf16 %v3713_v55, %v3712_v40  ;;  %v3833_v44 = vld [vmem:[%s5981_s5 + $0x70] sm:$0xff]  ;;  %v3834_v17 = vld [vmem:[%s5981_s5 + $0x78] sm:$0xff] }
0x1470   :  { %4801 = vmatprep.subr.bf16.mxu1 %v4800_v59 }
0x1471   :  { %v3470_v53 = vpop.permute.xlu1 %3469  ;;  %4803 = vmatpush3.bf16.msra.mxu1 %v4800_v59  ;;  %v3716_v59 = vsub.s32 6, %v5342_v30 }
0x1472   :  { %v3518_v7 = vsel %vm3514_vm7, %v3513_v2, %v3470_v53  ;;  %4805 = vmatprep.subr.bf16.mxu1 %v4804_v60  ;;  %v3820_v53 = vld [vmem:[%s5981_s5 + $0x8] sm:$0xff]  ;;  %v3822_v2 = vld [vmem:[%s5981_s5 + $0x18] sm:$0xff] }
0x1473   :  { %v4808_v61 = vpack.c.bf16 %v3820_v53, %v3819_v56 }
0x1475   :  { %v3486_v8 = vpop.permute.xlu1 %3485  ;;  %4807 = vmatpush3.bf16.msra.mxu1 %v4804_v60  ;;  %4809 = vmatprep.subr.bf16.mxu0 %v4808_v61 }
0x1476   :  { %v3523_v9 = vsel %vm3519_vm8, %v3518_v7, %v3486_v8  ;;  %v4812_v7 = vpack.c.bf16 %v3822_v2, %v3821_v42  ;;  %v3823_v8 = vld [vmem:[%s5981_s5 + $0x20] sm:$0xff]  ;;  %4811 = vmatpush3.bf16.msra.mxu0 %v4808_v61 }
0x1477   :  { %4538 = vmatmul.mubr.msk.f32.gmra.mrb[38].mxu1 %vm87_vm0, %v3523_v9  ;;  %v3824_v9 = vld [vmem:[%s5981_s5 + $0x28] sm:$0xff] }
0x1478   :  { %4813 = vmatprep.subr.bf16.mxu0 %v4812_v7 }
0x147a   :  { %4815 = vmatpush3.bf16.msra.mxu0 %v4812_v7 }
0x1537   :  { %v4536_v36 = vpop.f32.mrb[36].mxu1 }
0x1538   :  { %v3620_v15 = vadd.f32 %v4536_v36, %v3535_v12  ;;  %v3614_v49 = vpop.f32.mrb[37].mxu1  ;;  %v3825_v36 = vld [vmem:[%s5981_s5 + $0x30] sm:$0xff] }
0x1539   :  { %v3615_v4 = vadd.f32 %v3614_v49, %v3535_v12 }
0x153a   :  { %v3634_v6 = vadd.f32 %v5153_v52, %v3620_v15  ;;  %v3826_v15 = vld [vmem:[%s5981_s5 + $0x38] sm:$0xff]  ;;  %v3828_v52 = vld [vmem:[%s5981_s5 + $0x48] sm:$0xff] }
0x153b   :  { %v3633_v21 = vadd.f32 %v5154_v18, %v3615_v4  ;;  %v4820_v49 = vpack.c.bf16 %v3826_v15, %v3825_v36  ;;  %v3827_v4 = vld [vmem:[%s5981_s5 + $0x40] sm:$0xff]  ;;  %v3829_v18 = vld [vmem:[%s5981_s5 + $0x50] sm:$0xff] }
0x153c   :  { %v3640_v22 = vsel %vm87_vm0, %v3634_v6, 0.0 }
0x153d   :  { %3641 = vadd.xlane.f32.xlu1 %v3640_v22  ;;  %v3637_v43 = vsel %vm87_vm0, %v3633_v21, 0.0 }
0x153e   :  { %3638 = vadd.xlane.f32.xlu0 %v3637_v43  ;;  %v3831_v43 = vld [vmem:[%s5981_s5 + $0x60] sm:$0xff] }
0x154a   :  { %v4539_v27 = vpop.f32.mrb[38].mxu1 }
0x154b   :  { %v3624_v28 = vpop.f32.mrb[39].mxu1  ;;  %v3630_v5 = vadd.f32 %v4539_v27, %v3535_v12  ;;  %v3832_v27 = vld [vmem:[%s5981_s5 + $0x68] sm:$0xff] }
0x154c   :  { %v3625_v37 = vadd.f32 %v3624_v28, %v3535_v12  ;;  %v4816_v12 = vpack.c.bf16 %v3824_v9, %v3823_v8  ;;  %v4832_v28 = vpack.c.bf16 %v3832_v27, %v3831_v43 }
0x154d   :  { %v3636_v41 = vadd.f32 %v5156_v39, %v3630_v5 }
0x154e   :  { %v3635_v31 = vadd.f32 %v5155_v38, %v3625_v37  ;;  %4817 = vmatprep.subr.bf16.mxu0 %v4816_v12 }
0x154f   :  { %v3646_v35 = vsel %vm87_vm0, %v3636_v41, 0.0  ;;  %4819 = vmatpush3.bf16.msra.mxu0 %v4816_v12 }
0x1550   :  { %v3643_v0 = vsel %vm87_vm0, %v3635_v31, 0.0  ;;  %4821 = vmatprep.subr.bf16.mxu0 %v4820_v49 }
0x1551   :  { %3644 = vadd.xlane.f32.xlu0 %v3643_v0  ;;  %v3692_v0 = vsub.s32 2, %v5342_v30 }
0x1553   :  { %4823 = vmatpush3.bf16.msra.mxu0 %v4820_v49  ;;  %v3838_v49 = vrot.slane %v5860_v16, %v83_v34 }
0x1555   :  { %3647 = vadd.xlane.f32.xlu0 %v3646_v35  ;;  %v3700_v35 = vsub.s32 3, %v5342_v30 }
0x15ca   :  { %v3642_v51 = vpop.xlane.xlu1 %3641 }
0x15cb   :  { %v3651_v33 = vmul.f32 0.015625, %v3642_v51  ;;  %v3639_v32 = vpop.xlane.xlu0 %3638  ;;  %v3693_v51 = vrot.slane %v5860_v16, %v3692_v0 }
0x15cc   :  { %v3650_v29 = vmul.f32 0.015625, %v3639_v32 }
0x15cd   :  { %v5869_v48 = vsub.f32 %v3634_v6, %v3651_v33  ;;  %v4824_v6 = vpack.c.bf16 %v3828_v52, %v3827_v4 }
0x15ce   :  { %v5871_v47 = vsub.f32 %v3633_v21, %v3650_v29  ;;  %v3830_v21 = vld [vmem:[%s5981_s5 + $0x58] sm:$0xff] }
0x15cf   :  { %v3659_v57 = vmul.f32 %v5869_v48, %v5869_v48  ;;  %4825 = vmatprep.subr.bf16.mxu0 %v4824_v6  ;;  %v4828_v22 = vpack.c.bf16 %v3830_v21, %v3829_v18 }
0x15d0   :  { %v3658_v19 = vmul.f32 %v5871_v47, %v5871_v47  ;;  %4827 = vmatpush3.bf16.msra.mxu0 %v4824_v6 }
0x15d1   :  { %v3665_v20 = vsel %vm87_vm0, %v3659_v57, 0.0  ;;  %4829 = vmatprep.subr.bf16.mxu0 %v4828_v22 }
0x15d2   :  { %3666 = vadd.xlane.f32.xlu0 %v3665_v20  ;;  %v3662_v11 = vsel %vm87_vm0, %v3658_v19, 0.0  ;;  %v3701_v19 = vrot.slane %v5860_v16, %v3700_v35 }
0x15d3   :  { %3663 = vadd.xlane.f32.xlu1 %v3662_v11 }
0x15d4   :  { %4831 = vmatpush3.bf16.msra.mxu0 %v4828_v22 }
0x15d5   :  { %4833 = vmatprep.subr.bf16.mxu0 %v4832_v28 }
0x15d8   :  { %4835 = vmatpush3.bf16.msra.mxu0 %v4832_v28 }
0x15de   :  { %v3645_v25 = vpop.xlane.xlu0 %3644 }
0x15df   :  { %v3652_v26 = vmul.f32 0.015625, %v3645_v25 }
0x15e1   :  { %v5879_v10 = vsub.f32 %v3635_v31, %v3652_v26 }
0x15e2   :  { %v3648_v45 = vpop.xlane.xlu0 %3647 }
0x15e3   :  { %v3653_v46 = vmul.f32 0.015625, %v3648_v45  ;;  %v3660_v58 = vmul.f32 %v5879_v10, %v5879_v10 }
0x15e5   :  { %v5883_v54 = vsub.f32 %v3636_v41, %v3653_v46  ;;  %v3668_v13 = vsel %vm87_vm0, %v3660_v58, 0.0 }
0x15e6   :  { %3669 = vadd.xlane.f32.xlu1 %v3668_v13 }
0x15e7   :  { %v3661_v23 = vmul.f32 %v5883_v54, %v5883_v54 }
0x15e9   :  { %v3671_v3 = vsel %vm87_vm0, %v3661_v23, 0.0 }
0x15ea   :  { %3672 = vadd.xlane.f32.xlu0 %v3671_v3 }
0x165f   :  { %v3667_v5 = vpop.xlane.xlu0 %3666 }
0x1660   :  { %v3675_v37 = vmul.f32 0.015625, %v3667_v5  ;;  %v3664_v38 = vpop.xlane.xlu1 %3663 }
0x1661   :  { %v3674_v31 = vmul.f32 0.015625, %v3664_v38 }
0x1662   :  { %v3679_v39 = vadd.f32 1e-05, %v3675_v37 }
0x1663   :  { %v3678_v41 = vadd.f32 1e-05, %v3674_v31 }
0x1664   :  { %5137 = vrsqrt.f32 %v3679_v39 }
0x1665   :  { %5139 = vrsqrt.f32 %v3678_v41 }
0x166e   :  { %v5138_v33 = vpop.eup %5137 }
0x166f   :  { %v5140_v32 = vpop.eup %5139  ;;  %v3687_v29 = vmul.f32 %v5138_v33, %v5869_v48 }
0x1670   :  { %v3686_v57 = vmul.f32 %v5140_v32, %v5871_v47 }
0x1671   :  { %v3695_v20 = vmul.f32 %v3693_v51, %v3687_v29 }
0x1672   :  { %v3694_v11 = vmul.f32 %v3693_v51, %v3686_v57 }
0x1673   :  { %v3670_v25 = vpop.xlane.xlu1 %3669  ;;  %v3703_v46 = vadd.f32 %v3701_v19, %v3695_v20 }
0x1674   :  { %v3676_v26 = vmul.f32 0.015625, %v3670_v25  ;;  %v3702_v45 = vadd.f32 %v3701_v19, %v3694_v11 }
0x1676   :  { %v3680_v58 = vadd.f32 1e-05, %v3676_v26  ;;  %4556 = vmatprep.mubr.msk.f32.mxu1 %vm87_vm0, %v3702_v45 }
0x1677   :  { %4557 = vmatmul.mubr.msk.f32.vlgmr.msra.gmra.mrb[40].mxu1 %vm87_vm0, %v3703_v46  ;;  %v3673_v13 = vpop.xlane.xlu0 %3672 }
0x1678   :  { %5141 = vrsqrt.f32 %v3680_v58  ;;  %v3677_v14 = vmul.f32 0.015625, %v3673_v13 }
0x167a   :  { %v3681_v24 = vadd.f32 1e-05, %v3677_v14 }
0x167c   :  { %5143 = vrsqrt.f32 %v3681_v24 }
0x1682   :  { %v5142_v48 = vpop.eup %5141 }
0x1683   :  { %v3688_v47 = vmul.f32 %v5142_v48, %v5879_v10  ;;  %v4836_v10 = vpack.c.bf16 %v3834_v17, %v3833_v44 }
0x1685   :  { %v3696_v23 = vmul.f32 %v3693_v51, %v3688_v47  ;;  %4837 = vmatprep.subr.bf16.mxu0 %v4836_v10 }
0x1686   :  { %v5144_v1 = vpop.eup %5143  ;;  %4839 = vmatpush3.bf16.msra.mxu0 %v4836_v10 }
0x1687   :  { %v3704_v3 = vadd.f32 %v3701_v19, %v3696_v23  ;;  %v3689_v62 = vmul.f32 %v5144_v1, %v5883_v54  ;;  %v3717_v54 = vrot.slane %v5860_v16, %v3716_v59 }
0x1689   :  { %4559 = vmatprep.mubr.msk.f32.mxu1 %vm87_vm0, %v3704_v3  ;;  %v3697_v63 = vmul.f32 %v3693_v51, %v3689_v62 }
0x168b   :  { %v3705_v50 = vadd.f32 %v3701_v19, %v3697_v63 }
0x168d   :  { %4560 = vmatmul.mubr.msk.f32.gmra.mrb[42].mxu1 %vm87_vm0, %v3705_v50 }
0x174a   :  { %v4558_v40 = vpop.f32.mrb[40].mxu1 }
0x174b   :  { %v3802_v55 = vadd.f32 %v4558_v40, %v3717_v54  ;;  %v3796_v60 = vpop.f32.mrb[41].mxu1  ;;  %v3990_v40 = vsub.s32 5, %v5342_v30 }
0x174c   :  { %v3797_v56 = vadd.f32 %v3796_v60, %v3717_v54 }
0x174d   :  { %v3816_v42 = vmax.f32 %v3802_v55, 0.0 }
0x174e   :  { %v3815_v53 = vmax.f32 %v3797_v56, 0.0 }
0x1750   :  { %4594 = vmatprep.mubr.f32.mxu0 %v3815_v53 }
0x1751   :  { %4595 = vmatmul.mubr.f32.vlgmr.msra.gmra.mrb[36].mxu0 %v3816_v42  ;;  %v3991_v42 = vrot.slane %v5860_v16, %v3990_v40 }
0x1760   :  { %v4561_v61 = vpop.f32.mrb[42].mxu1 }
0x1761   :  { %v3812_v2 = vadd.f32 %v4561_v61, %v3717_v54  ;;  %v3806_v7 = vpop.f32.mrb[43].mxu1 }
0x1762   :  { %v3807_v8 = vadd.f32 %v3806_v7, %v3717_v54  ;;  %v3982_v54 = vsub.s32 4, %v5342_v30 }
0x1763   :  { %v3818_v12 = vmax.f32 %v3812_v2, 0.0 }
0x1764   :  { %v3817_v9 = vmax.f32 %v3807_v8, 0.0  ;;  %v3983_v55 = vrot.slane %v5860_v16, %v3982_v54 }
0x1766   :  { %4597 = vmatprep.mubr.f32.mxu0 %v3817_v9 }
0x1767   :  { %4598 = vmatmul.mubr.f32.gmra.mrb[38].mxu0 %v3818_v12 }
0x1824   :  { %v4596_v36 = vpop.f32.mrb[36].mxu0 }
0x1825   :  { %v3905_v15 = vpop.f32.mrb[37].mxu0  ;;  %v3911_v52 = vadd.f32 %v4596_v36, %v3838_v49 }
0x1826   :  { %v3906_v21 = vadd.f32 %v3905_v15, %v3838_v49 }
0x1827   :  { %v3925_v28 = vadd.f32 %v3911_v52, %v3703_v46 }
0x1828   :  { %v3924_v37 = vadd.f32 %v3906_v21, %v3702_v45 }
0x1829   :  { %v3931_v31 = vsel %vm87_vm0, %v3925_v28, 0.0 }
0x182a   :  { %v3928_v34 = vsel %vm87_vm0, %v3924_v37, 0.0 }
0x183a   :  { %v4599_v4 = vpop.f32.mrb[38].mxu0 }
0x183b   :  { %v3921_v6 = vadd.f32 %v4599_v4, %v3838_v49  ;;  %v3915_v18 = vpop.f32.mrb[39].mxu0 }
0x183c   :  { %v3916_v22 = vadd.f32 %v3915_v18, %v3838_v49 }
0x183d   :  { %v3927_v43 = vadd.f32 %v3921_v6, %v3705_v50 }
0x183e   :  { %v3926_v27 = vadd.f32 %v3916_v22, %v3704_v3 }
0x183f   :  { %v3937_v5 = vsel %vm87_vm0, %v3927_v43, 0.0 }
0x1840   :  { %3938 = vadd.xlane.f32.xlu0 %v3937_v5  ;;  %v3934_v38 = vsel %vm87_vm0, %v3926_v27, 0.0 }
0x1841   :  { %3935 = vadd.xlane.f32.xlu1 %v3934_v38 }
0x1844   :  { %3932 = vadd.xlane.f32.xlu0 %v3931_v31 }
0x1845   :  { %3929 = vadd.xlane.f32.xlu1 %v3928_v34 }
0x18cd   :  { %v3939_v39 = vpop.xlane.xlu0 %3938 }
0x18ce   :  { %v3943_v41 = vmul.f32 0.015625, %v3939_v39  ;;  %v3936_v0 = vpop.xlane.xlu1 %3935 }
0x18cf   :  { %v3942_v35 = vmul.f32 0.015625, %v3936_v0 }
0x18d0   :  { %v3947_v51 = vsub.f32 %v3927_v43, %v3943_v41 }
0x18d1   :  { %v3946_v33 = vsub.f32 %v3926_v27, %v3942_v35  ;;  %v3933_v32 = vpop.xlane.xlu0 %3932 }
0x18d2   :  { %v3941_v29 = vmul.f32 0.015625, %v3933_v32  ;;  %v3930_v57 = vpop.xlane.xlu1 %3929  ;;  %v3951_v19 = vmul.f32 %v3947_v51, %v3947_v51 }
0x18d3   :  { %v3940_v20 = vmul.f32 0.015625, %v3930_v57  ;;  %v3950_v11 = vmul.f32 %v3946_v33, %v3946_v33 }
0x18d4   :  { %v3945_v25 = vsub.f32 %v3925_v28, %v3941_v29  ;;  %v3961_v26 = vsel %vm87_vm0, %v3951_v19, 0.0 }
0x18d5   :  { %v3944_v45 = vsub.f32 %v3924_v37, %v3940_v20  ;;  %3962 = vadd.xlane.f32.xlu0 %v3961_v26  ;;  %v3958_v46 = vsel %vm87_vm0, %v3950_v11, 0.0 }
0x18d6   :  { %3959 = vadd.xlane.f32.xlu1 %v3958_v46  ;;  %v3949_v58 = vmul.f32 %v3945_v25, %v3945_v25 }
0x18d7   :  { %v3948_v13 = vmul.f32 %v3944_v45, %v3944_v45 }
0x18d8   :  { %v3955_v14 = vsel %vm87_vm0, %v3949_v58, 0.0 }
0x18d9   :  { %3956 = vadd.xlane.f32.xlu0 %v3955_v14  ;;  %v3952_v24 = vsel %vm87_vm0, %v3948_v13, 0.0 }
0x18da   :  { %3953 = vadd.xlane.f32.xlu1 %v3952_v24 }
0x1962   :  { %v3963_v48 = vpop.xlane.xlu0 %3962 }
0x1963   :  { %v3967_v47 = vmul.f32 0.015625, %v3963_v48  ;;  %v3960_v23 = vpop.xlane.xlu1 %3959 }
0x1964   :  { %v3966_v1 = vmul.f32 0.015625, %v3960_v23 }
0x1965   :  { %v3971_v3 = vadd.f32 1e-05, %v3967_v47 }
0x1966   :  { %v3970_v62 = vadd.f32 1e-05, %v3966_v1  ;;  %v3957_v63 = vpop.xlane.xlu0 %3956 }
0x1967   :  { %5145 = vrsqrt.f32 %v3971_v3  ;;  %v3965_v50 = vmul.f32 0.015625, %v3957_v63  ;;  %v3954_v44 = vpop.xlane.xlu1 %3953 }
0x1968   :  { %5147 = vrsqrt.f32 %v3970_v62  ;;  %v3964_v17 = vmul.f32 0.015625, %v3954_v44 }
0x1969   :  { %v3969_v10 = vadd.f32 1e-05, %v3965_v50 }
0x196a   :  { %v3968_v59 = vadd.f32 1e-05, %v3964_v17 }
0x196b   :  { %5149 = vrsqrt.f32 %v3969_v10 }
0x196c   :  { %5151 = vrsqrt.f32 %v3968_v59 }
0x1971   :  { %v5146_v60 = vpop.eup %5145 }
0x1972   :  { %v5148_v56 = vpop.eup %5147  ;;  %v3979_v53 = vmul.f32 %v5146_v60, %v3947_v51 }
0x1973   :  { %v3978_v61 = vmul.f32 %v5148_v56, %v3946_v33 }
0x1974   :  { %v3987_v2 = vmul.f32 %v3983_v55, %v3979_v53 }
0x1975   :  { %v5150_v7 = vpop.eup %5149  ;;  %v3986_v8 = vmul.f32 %v3983_v55, %v3978_v61 }
0x1976   :  { %v5152_v9 = vpop.eup %5151  ;;  %v3995_v12 = vadd.f32 %v3991_v42, %v3987_v2  ;;  %v3977_v36 = vmul.f32 %v5150_v7, %v3945_v25 }
0x1977   :  { %v3994_v15 = vadd.f32 %v3991_v42, %v3986_v8  ;;  %v3976_v49 = vmul.f32 %v5152_v9, %v3944_v45 }
0x1978   :  { %4000 = vrot.lane.b32.xlu0 %v3995_v12, %s5210_s2  ;;  %v3985_v4 = vmul.f32 %v3983_v55, %v3977_v36 }
0x1979   :  { %3998 = vrot.lane.b32.xlu1 %v3994_v15, %s5210_s2  ;;  %v3984_v30 = vmul.f32 %v3983_v55, %v3976_v49 }
0x197a   :  { %v3993_v52 = vadd.f32 %v3991_v42, %v3985_v4 }
0x197b   :  { %v3992_v6 = vadd.f32 %v3991_v42, %v3984_v30 }
0x19ea   :  { %v4001_v18 = vpop.permute.xlu0 %4000 }
0x19eb   :  { %v4005_v16 = vsel %vm87_vm0, %v3993_v52, %v4001_v18  ;;  %v3999_v21 = vpop.permute.xlu1 %3998 }
0x19ec   :  { %4007 = vst [vmem:[%s5983_s7 + $0x8] sm:$0xff] %v4005_v16  ;;  %v4004_v22 = vsel %vm87_vm0, %v3992_v6, %v3999_v21 }
0x19ed   :  { %4006 = vst [vmem:[%s5983_s7] sm:$0xff] %v4004_v22 }
0x19ee   :  { %4012 = vsyncpa [#allocation3], 1 }
0x19ef   :  { %4013 = vsyncpa [#allocation5], 1 }

</bundles_post_ra>
